<compile_context>
chip_gen: v5e
topology: v5e:2x2
jax: 0.10.0
libtpu: 0.0.40
codegen_flags: <defaults>
</compile_context>

<pallas_src>
from functools import partial

import jax
import jax.numpy as jnp
from jax import lax
from jax.experimental import pallas as pl
from jax.experimental.pallas import tpu as pltpu

LANE = 128
SUBLANE = 8


def _round_up(n, m):
    return ((n + m - 1) // m) * m


def central_kernel(x_ref, w1_ref, b1_ref, wih_ref, bih_ref, whh_ref, bhhn_ref,
                   w2_ref, b2_ref, w3_ref, b3_ref, q_ref, *, batch, seq):
    """Whole-model forward over all (seq * padded-batch) rows.

    x_ref    : (S*Bp, P*I)  timestep-major flattened observations
    w*_ref   : pre-transposed, lane-padded weights (in, out)
    b*_ref   : biases as (1, out); bih already has the r/z bhh halves folded in
    bhhn_ref : (1, Hp) n-gate hidden bias (kept separate: scaled by r)
    q_ref    : (S*Bp, PNAp) padded Q-values (lane-dense output)
    """
    Hp = w1_ref.shape[1]                     # padded hidden size (multiple of 128)

    # linear1 + ReLU for every (timestep, batch) row at once: (S*Bp, PI)@(PI, Hp)
    x1 = jnp.maximum(
        jnp.dot(x_ref[...], w1_ref[...], preferred_element_type=jnp.float32)
        + b1_ref[...], 0.0)

    # GRU input-side projections for all timesteps in one matmul: (S*Bp, 3Hp)
    gi = (jnp.dot(x1, wih_ref[...], preferred_element_type=jnp.float32)
          + bih_ref[...])

    # hoist loop invariants (JAX does not CSE broadcast_in_dim)
    whh = whh_ref[...]                                        # (Hp, 3Hp)
    bhh_n = jnp.broadcast_to(bhhn_ref[...], (batch, Hp))      # (Bp, Hp)

    # GRU recurrence: hidden carried in registers, loop fully unrolled.
    # PyTorch gate order is (r, z, n); initial hidden is zero (reset()).
    h = jnp.zeros((batch, Hp), jnp.float32)
    hs = []
    for t in range(seq):
        gi_t = gi[t * batch:(t + 1) * batch, :]               # (Bp, 3Hp) aligned slice
        gh = jnp.dot(h, whh, preferred_element_type=jnp.float32)
        r = jax.nn.sigmoid(gi_t[:, 0:Hp] + gh[:, 0:Hp])
        z = jax.nn.sigmoid(gi_t[:, Hp:2 * Hp] + gh[:, Hp:2 * Hp])
        n = jnp.tanh(gi_t[:, 2 * Hp:3 * Hp] + r * (gh[:, 2 * Hp:3 * Hp] + bhh_n))
        h = (1.0 - z) * n + z * h
        hs.append(h)

    hseq = jnp.concatenate(hs, axis=0)                        # (S*Bp, Hp), in regs

    # linear2 + ReLU and linear3 over all timesteps at once
    x2 = jnp.maximum(
        jnp.dot(hseq, w2_ref[...], preferred_element_type=jnp.float32)
        + b2_ref[...], 0.0)
    q_ref[...] = (jnp.dot(x2, w3_ref[...], preferred_element_type=jnp.float32)
                  + b3_ref[...])


def prepack_params(params):
    """One-time weight packing: transpose, lane-pad, and fold r/z bhh into bih.

    Call once at parameter-load time; the result is reused on every forward.
    """
    f32 = jnp.float32
    H, PI = params["w1"].shape
    PNA = params["w3"].shape[0]
    Hp = _round_up(H, LANE)
    PNAp = _round_up(PNA, LANE)

    def padto(a, shape):
        return jnp.pad(a, [(0, t - s) for s, t in zip(a.shape, shape)])

    # GRU weights: pad each gate block separately so gates sit at lane offsets
    # 0 / Hp / 2Hp after transposition.  Padded lanes stay exactly zero through
    # the whole network, so results on real lanes are unchanged.
    def pad_gru_w(w):                              # (3H, H) -> (Hp, 3Hp)
        w3g = w.astype(f32).reshape(3, H, H)
        w3g = jnp.pad(w3g, ((0, 0), (0, Hp - H), (0, Hp - H)))
        return w3g.transpose(2, 0, 1).reshape(Hp, 3 * Hp)

    def pad_gru_b(b):                              # (3H,) -> (1, 3Hp)
        b3g = b.astype(f32).reshape(3, H)
        b3g = jnp.pad(b3g, ((0, 0), (0, Hp - H)))
        return b3g.reshape(1, 3 * Hp)

    bih = pad_gru_b(params["bih"])
    bhh = pad_gru_b(params["bhh"])
    # r/z gate biases add unconditionally -> fold bhh_r, bhh_z into bih.
    # The n-gate bhh stays separate: PyTorch computes n = tanh(gi_n + r*(gh_n + bhh_n)).
    bih_folded = bih.at[:, :2 * Hp].add(bhh[:, :2 * Hp])
    bhh_n = bhh[:, 2 * Hp:3 * Hp]                  # (1, Hp)

    return {
        "w1t": padto(params["w1"].astype(f32).T, (PI, Hp)),
        "b1": padto(params["b1"].astype(f32).reshape(1, H), (1, Hp)),
        "wiht": pad_gru_w(params["wih"]),
        "bih": bih_folded,
        "whht": pad_gru_w(params["whh"]),
        "bhh_n": bhh_n,
        "w2t": padto(params["w2"].astype(f32).T, (Hp, Hp)),
        "b2": padto(params["b2"].astype(f32).reshape(1, H), (1, Hp)),
        "w3t": padto(params["w3"].astype(f32).T, (Hp, PNAp)),
        "b3": padto(params["b3"].astype(f32).reshape(1, PNA), (1, PNAp)),
    }


@partial(jax.jit, static_argnames=("n_actions",))
def central_agent_forward(view, packed, *, n_actions):
    """view: (B, S, P, I) f32, packed = prepack_params(params) -> q: (B, S, P, NA)."""
    f32 = jnp.float32
    B, S, P, I = view.shape
    PI = P * I
    Hp = packed["w1t"].shape[1]
    PNAp = packed["w3t"].shape[1]
    PNA = P * n_actions

    Bp = _round_up(B, SUBLANE)                    # sublane-aligned batch
    SBp = S * Bp

    # timestep-major layout, batch zero-padded to a sublane multiple so every
    # per-step gi slice / hidden carry in the kernel is (8,128)-tile aligned.
    x = view.reshape(B, S, PI).astype(f32)
    x = jnp.transpose(x, (1, 0, 2))               # (S, B, PI)
    x = jnp.pad(x, ((0, 0), (0, Bp - B), (0, 0))) # (S, Bp, PI)
    x = x.reshape(SBp, PI)

    operands = (x, packed["w1t"], packed["b1"], packed["wiht"], packed["bih"],
                packed["whht"], packed["bhh_n"], packed["w2t"], packed["b2"],
                packed["w3t"], packed["b3"])

    q_flat = pl.pallas_call(
        partial(central_kernel, batch=Bp, seq=S),
        out_shape=jax.ShapeDtypeStruct((SBp, PNAp), f32),
        in_specs=[pl.BlockSpec(memory_space=pltpu.MemorySpace.VMEM)
                  for _ in operands],
        out_specs=pl.BlockSpec(memory_space=pltpu.MemorySpace.VMEM),
    )(*operands)

    # drop batch/lane padding, back to batch-major, split agents/actions
    q = q_flat.reshape(S, Bp, PNAp)[:, :B, :PNA]
    q = jnp.transpose(q, (1, 0, 2)).reshape(B, S, P, n_actions)
    return q


def make_params(key, view_size, n_agents, hidden_size, n_actions):
    """Deterministic init mirroring the PyTorch module's parameter shapes."""
    ks = jax.random.split(key, 10)

    def unif(k, shape, fan_in):
        bound = 1.0 / jnp.sqrt(fan_in)
        return jax.random.uniform(k, shape, jnp.float32, -bound, bound)

    pi = view_size * n_agents
    h = hidden_size
    pna = n_actions * n_agents
    return {
        # linear1: (H, P*I)
        "w1": unif(ks[0], (h, pi), pi), "b1": unif(ks[1], (h,), pi),
        # GRU (batch_first): weight_ih (3H, H), weight_hh (3H, H)
        "wih": unif(ks[2], (3 * h, h), h), "bih": unif(ks[3], (3 * h,), h),
        "whh": unif(ks[4], (3 * h, h), h), "bhh": unif(ks[5], (3 * h,), h),
        # linear2: (H, H)
        "w2": unif(ks[6], (h, h), h), "b2": unif(ks[7], (h,), h),
        # linear3: (P*NA, H)
        "w3": unif(ks[8], (pna, h), h), "b3": unif(ks[9], (pna,), h),
    }


def reference_forward(view, params):
    """Pure-JAX reference matching the PyTorch forward (rnn1=True, linear2=True)."""
    B, S, P, I = view.shape
    H = params["w1"].shape[0]
    x = view.reshape(B, S, P * I)
    x = jax.nn.relu(x @ params["w1"].T + params["b1"])

    def scan_fn(h, xt):
        gi = xt @ params["wih"].T + params["bih"]
        gh = h @ params["whh"].T + params["bhh"]
        r = jax.nn.sigmoid(gi[:, :H] + gh[:, :H])
        z = jax.nn.sigmoid(gi[:, H:2 * H] + gh[:, H:2 * H])
        n = jnp.tanh(gi[:, 2 * H:] + r * gh[:, 2 * H:])
        h_new = (1.0 - z) * n + z * h
        return h_new, h_new

    h0 = jnp.zeros((B, H), jnp.float32)
    _, ys = lax.scan(scan_fn, h0, jnp.swapaxes(x, 0, 1))
    x = jnp.swapaxes(ys, 0, 1)
    x = jax.nn.relu(x @ params["w2"].T + params["b2"])
    q = x @ params["w3"].T + params["b3"]
    return q.reshape(B, S, P, -1)


if __name__ == "__main__":
    # small shapes consistent with the module's forward
    B, S, P, I = 2, 8, 4, 16          # batch, seq, n_agents, view_size
    HIDDEN, N_ACTIONS = 32, 5

    key = jax.random.PRNGKey(0)
    k_view, k_params = jax.random.split(key)
    view = jax.random.normal(k_view, (B, S, P, I), jnp.float32)
    params = make_params(k_params, I, P, HIDDEN, N_ACTIONS)

    packed = prepack_params(params)   # one-time weight packing (off hot path)

    q = central_agent_forward(view, packed, n_actions=N_ACTIONS)
    q = jax.block_until_ready(q)

    q_ref = reference_forward(view, params)
    assert q.shape == (B, S, P, N_ACTIONS)
    assert jnp.allclose(q, q_ref, atol=1e-4, rtol=1e-4), (
        float(jnp.max(jnp.abs(q - q_ref))))

    print("KERNEL_OK")
</pallas_src>

<mosaic_0001>
module attributes {stable_mosaic.version = 11 : i64} {
  func.func @central_kernel(%arg0: memref<64x64xf32, #tpu.memory_space<vmem>>, %arg1: memref<64x128xf32, #tpu.memory_space<vmem>>, %arg2: memref<1x128xf32, #tpu.memory_space<vmem>>, %arg3: memref<128x384xf32, #tpu.memory_space<vmem>>, %arg4: memref<1x384xf32, #tpu.memory_space<vmem>>, %arg5: memref<128x384xf32, #tpu.memory_space<vmem>>, %arg6: memref<1x128xf32, #tpu.memory_space<vmem>>, %arg7: memref<128x128xf32, #tpu.memory_space<vmem>>, %arg8: memref<1x128xf32, #tpu.memory_space<vmem>>, %arg9: memref<128x128xf32, #tpu.memory_space<vmem>>, %arg10: memref<1x128xf32, #tpu.memory_space<vmem>>, %arg11: memref<64x128xf32, #tpu.memory_space<vmem>>) attributes {dimension_semantics = [], scalar_prefetch = 0 : i64, scratch_operands = 0 : i64, tpu.core_type = #tpu.core_type<tc>} {
    %c0 = arith.constant 0 : index
    %c0_0 = arith.constant 0 : index
    %0 = vector.load %arg0[%c0, %c0_0] : memref<64x64xf32, #tpu.memory_space<vmem>>, vector<64x64xf32>
    %c0_1 = arith.constant 0 : index
    %c0_2 = arith.constant 0 : index
    %1 = vector.load %arg1[%c0_1, %c0_2] : memref<64x128xf32, #tpu.memory_space<vmem>>, vector<64x128xf32>
    %cst = arith.constant dense<0.000000e+00> : vector<64x128xf32>
    %2 = tpu.matmul %0, %1, %cst {dimension_numbers = #tpu.dot_dimension_numbers<[1], [0], [0], [1], [0, 0, 1, 1], [], []>} : vector<64x64xf32>, vector<64x128xf32>, vector<64x128xf32> -> vector<64x128xf32>
    %c0_3 = arith.constant 0 : index
    %c0_4 = arith.constant 0 : index
    %3 = vector.load %arg2[%c0_3, %c0_4] : memref<1x128xf32, #tpu.memory_space<vmem>>, vector<1x128xf32>
    %4 = vector.broadcast %3 : vector<1x128xf32> to vector<64x128xf32>
    %5 = arith.addf %2, %4 : vector<64x128xf32>
    %cst_5 = arith.constant 0.000000e+00 : f32
    %6 = vector.broadcast %cst_5 : f32 to vector<64x128xf32>
    %7 = arith.maximumf %5, %6 : vector<64x128xf32>
    %c0_6 = arith.constant 0 : index
    %c0_7 = arith.constant 0 : index
    %8 = vector.load %arg3[%c0_6, %c0_7] : memref<128x384xf32, #tpu.memory_space<vmem>>, vector<128x384xf32>
    %cst_8 = arith.constant dense<0.000000e+00> : vector<64x384xf32>
    %9 = tpu.matmul %7, %8, %cst_8 {dimension_numbers = #tpu.dot_dimension_numbers<[1], [0], [0], [1], [0, 0, 1, 1], [], []>} : vector<64x128xf32>, vector<128x384xf32>, vector<64x384xf32> -> vector<64x384xf32>
    %c0_9 = arith.constant 0 : index
    %c0_10 = arith.constant 0 : index
    %10 = vector.load %arg4[%c0_9, %c0_10] : memref<1x384xf32, #tpu.memory_space<vmem>>, vector<1x384xf32>
    %11 = vector.broadcast %10 : vector<1x384xf32> to vector<64x384xf32>
    %12 = arith.addf %9, %11 : vector<64x384xf32>
    %c0_11 = arith.constant 0 : index
    %c0_12 = arith.constant 0 : index
    %13 = vector.load %arg5[%c0_11, %c0_12] : memref<128x384xf32, #tpu.memory_space<vmem>>, vector<128x384xf32>
    %c0_13 = arith.constant 0 : index
    %c0_14 = arith.constant 0 : index
    %14 = vector.load %arg6[%c0_13, %c0_14] : memref<1x128xf32, #tpu.memory_space<vmem>>, vector<1x128xf32>
    %15 = vector.shape_cast %14 : vector<1x128xf32> to vector<1x128xf32>
    %16 = vector.broadcast %15 : vector<1x128xf32> to vector<8x128xf32>
    %cst_15 = arith.constant 0.000000e+00 : f32
    %17 = vector.broadcast %cst_15 : f32 to vector<8x128xf32>
    %18 = vector.extract_strided_slice %12 {offsets = [0, 0], sizes = [8, 384], strides = [1, 1]} : vector<64x384xf32> to vector<8x384xf32>
    %cst_16 = arith.constant dense<0.000000e+00> : vector<8x384xf32>
    %19 = tpu.matmul %17, %13, %cst_16 {dimension_numbers = #tpu.dot_dimension_numbers<[1], [0], [0], [1], [0, 0, 1, 1], [], []>} : vector<8x128xf32>, vector<128x384xf32>, vector<8x384xf32> -> vector<8x384xf32>
    %20 = vector.extract_strided_slice %18 {offsets = [0, 0], sizes = [8, 128], strides = [1, 1]} : vector<8x384xf32> to vector<8x128xf32>
    %21 = vector.extract_strided_slice %19 {offsets = [0, 0], sizes = [8, 128], strides = [1, 1]} : vector<8x384xf32> to vector<8x128xf32>
    %22 = arith.addf %20, %21 : vector<8x128xf32>
    %23 = arith.negf %22 : vector<8x128xf32>
    %24 = math.exp %23 : vector<8x128xf32>
    %cst_17 = arith.constant 1.000000e+00 : f32
    %25 = vector.broadcast %cst_17 : f32 to vector<8x128xf32>
    %26 = arith.addf %25, %24 : vector<8x128xf32>
    %27 = arith.divf %25, %26 : vector<8x128xf32>
    %28 = vector.extract_strided_slice %18 {offsets = [0, 128], sizes = [8, 128], strides = [1, 1]} : vector<8x384xf32> to vector<8x128xf32>
    %29 = vector.extract_strided_slice %19 {offsets = [0, 128], sizes = [8, 128], strides = [1, 1]} : vector<8x384xf32> to vector<8x128xf32>
    %30 = arith.addf %28, %29 : vector<8x128xf32>
    %31 = arith.negf %30 : vector<8x128xf32>
    %32 = math.exp %31 : vector<8x128xf32>
    %cst_18 = arith.constant 1.000000e+00 : f32
    %33 = vector.broadcast %cst_18 : f32 to vector<8x128xf32>
    %34 = arith.addf %33, %32 : vector<8x128xf32>
    %35 = arith.divf %33, %34 : vector<8x128xf32>
    %36 = vector.extract_strided_slice %18 {offsets = [0, 256], sizes = [8, 128], strides = [1, 1]} : vector<8x384xf32> to vector<8x128xf32>
    %37 = vector.extract_strided_slice %19 {offsets = [0, 256], sizes = [8, 128], strides = [1, 1]} : vector<8x384xf32> to vector<8x128xf32>
    %38 = arith.addf %37, %16 : vector<8x128xf32>
    %39 = arith.mulf %27, %38 : vector<8x128xf32>
    %40 = arith.addf %36, %39 : vector<8x128xf32>
    %41 = math.tanh %40 : vector<8x128xf32>
    %cst_19 = arith.constant 1.000000e+00 : f32
    %42 = vector.broadcast %cst_19 : f32 to vector<8x128xf32>
    %43 = arith.subf %42, %35 : vector<8x128xf32>
    %44 = arith.mulf %43, %41 : vector<8x128xf32>
    %45 = arith.mulf %35, %17 : vector<8x128xf32>
    %46 = arith.addf %44, %45 : vector<8x128xf32>
    %47 = vector.extract_strided_slice %12 {offsets = [8, 0], sizes = [8, 384], strides = [1, 1]} : vector<64x384xf32> to vector<8x384xf32>
    %cst_20 = arith.constant dense<0.000000e+00> : vector<8x384xf32>
    %48 = tpu.matmul %46, %13, %cst_20 {dimension_numbers = #tpu.dot_dimension_numbers<[1], [0], [0], [1], [0, 0, 1, 1], [], []>} : vector<8x128xf32>, vector<128x384xf32>, vector<8x384xf32> -> vector<8x384xf32>
    %49 = vector.extract_strided_slice %47 {offsets = [0, 0], sizes = [8, 128], strides = [1, 1]} : vector<8x384xf32> to vector<8x128xf32>
    %50 = vector.extract_strided_slice %48 {offsets = [0, 0], sizes = [8, 128], strides = [1, 1]} : vector<8x384xf32> to vector<8x128xf32>
    %51 = arith.addf %49, %50 : vector<8x128xf32>
    %52 = arith.negf %51 : vector<8x128xf32>
    %53 = math.exp %52 : vector<8x128xf32>
    %cst_21 = arith.constant 1.000000e+00 : f32
    %54 = vector.broadcast %cst_21 : f32 to vector<8x128xf32>
    %55 = arith.addf %54, %53 : vector<8x128xf32>
    %56 = arith.divf %54, %55 : vector<8x128xf32>
    %57 = vector.extract_strided_slice %47 {offsets = [0, 128], sizes = [8, 128], strides = [1, 1]} : vector<8x384xf32> to vector<8x128xf32>
    %58 = vector.extract_strided_slice %48 {offsets = [0, 128], sizes = [8, 128], strides = [1, 1]} : vector<8x384xf32> to vector<8x128xf32>
    %59 = arith.addf %57, %58 : vector<8x128xf32>
    %60 = arith.negf %59 : vector<8x128xf32>
    %61 = math.exp %60 : vector<8x128xf32>
    %cst_22 = arith.constant 1.000000e+00 : f32
    %62 = vector.broadcast %cst_22 : f32 to vector<8x128xf32>
    %63 = arith.addf %62, %61 : vector<8x128xf32>
    %64 = arith.divf %62, %63 : vector<8x128xf32>
    %65 = vector.extract_strided_slice %47 {offsets = [0, 256], sizes = [8, 128], strides = [1, 1]} : vector<8x384xf32> to vector<8x128xf32>
    %66 = vector.extract_strided_slice %48 {offsets = [0, 256], sizes = [8, 128], strides = [1, 1]} : vector<8x384xf32> to vector<8x128xf32>
    %67 = arith.addf %66, %16 : vector<8x128xf32>
    %68 = arith.mulf %56, %67 : vector<8x128xf32>
    %69 = arith.addf %65, %68 : vector<8x128xf32>
    %70 = math.tanh %69 : vector<8x128xf32>
    %cst_23 = arith.constant 1.000000e+00 : f32
    %71 = vector.broadcast %cst_23 : f32 to vector<8x128xf32>
    %72 = arith.subf %71, %64 : vector<8x128xf32>
    %73 = arith.mulf %72, %70 : vector<8x128xf32>
    %74 = arith.mulf %64, %46 : vector<8x128xf32>
    %75 = arith.addf %73, %74 : vector<8x128xf32>
    %76 = vector.extract_strided_slice %12 {offsets = [16, 0], sizes = [8, 384], strides = [1, 1]} : vector<64x384xf32> to vector<8x384xf32>
    %cst_24 = arith.constant dense<0.000000e+00> : vector<8x384xf32>
    %77 = tpu.matmul %75, %13, %cst_24 {dimension_numbers = #tpu.dot_dimension_numbers<[1], [0], [0], [1], [0, 0, 1, 1], [], []>} : vector<8x128xf32>, vector<128x384xf32>, vector<8x384xf32> -> vector<8x384xf32>
    %78 = vector.extract_strided_slice %76 {offsets = [0, 0], sizes = [8, 128], strides = [1, 1]} : vector<8x384xf32> to vector<8x128xf32>
    %79 = vector.extract_strided_slice %77 {offsets = [0, 0], sizes = [8, 128], strides = [1, 1]} : vector<8x384xf32> to vector<8x128xf32>
    %80 = arith.addf %78, %79 : vector<8x128xf32>
    %81 = arith.negf %80 : vector<8x128xf32>
    %82 = math.exp %81 : vector<8x128xf32>
    %cst_25 = arith.constant 1.000000e+00 : f32
    %83 = vector.broadcast %cst_25 : f32 to vector<8x128xf32>
    %84 = arith.addf %83, %82 : vector<8x128xf32>
    %85 = arith.divf %83, %84 : vector<8x128xf32>
    %86 = vector.extract_strided_slice %76 {offsets = [0, 128], sizes = [8, 128], strides = [1, 1]} : vector<8x384xf32> to vector<8x128xf32>
    %87 = vector.extract_strided_slice %77 {offsets = [0, 128], sizes = [8, 128], strides = [1, 1]} : vector<8x384xf32> to vector<8x128xf32>
    %88 = arith.addf %86, %87 : vector<8x128xf32>
    %89 = arith.negf %88 : vector<8x128xf32>
    %90 = math.exp %89 : vector<8x128xf32>
    %cst_26 = arith.constant 1.000000e+00 : f32
    %91 = vector.broadcast %cst_26 : f32 to vector<8x128xf32>
    %92 = arith.addf %91, %90 : vector<8x128xf32>
    %93 = arith.divf %91, %92 : vector<8x128xf32>
    %94 = vector.extract_strided_slice %76 {offsets = [0, 256], sizes = [8, 128], strides = [1, 1]} : vector<8x384xf32> to vector<8x128xf32>
    %95 = vector.extract_strided_slice %77 {offsets = [0, 256], sizes = [8, 128], strides = [1, 1]} : vector<8x384xf32> to vector<8x128xf32>
    %96 = arith.addf %95, %16 : vector<8x128xf32>
    %97 = arith.mulf %85, %96 : vector<8x128xf32>
    %98 = arith.addf %94, %97 : vector<8x128xf32>
    %99 = math.tanh %98 : vector<8x128xf32>
    %cst_27 = arith.constant 1.000000e+00 : f32
    %100 = vector.broadcast %cst_27 : f32 to vector<8x128xf32>
    %101 = arith.subf %100, %93 : vector<8x128xf32>
    %102 = arith.mulf %101, %99 : vector<8x128xf32>
    %103 = arith.mulf %93, %75 : vector<8x128xf32>
    %104 = arith.addf %102, %103 : vector<8x128xf32>
    %105 = vector.extract_strided_slice %12 {offsets = [24, 0], sizes = [8, 384], strides = [1, 1]} : vector<64x384xf32> to vector<8x384xf32>
    %cst_28 = arith.constant dense<0.000000e+00> : vector<8x384xf32>
    %106 = tpu.matmul %104, %13, %cst_28 {dimension_numbers = #tpu.dot_dimension_numbers<[1], [0], [0], [1], [0, 0, 1, 1], [], []>} : vector<8x128xf32>, vector<128x384xf32>, vector<8x384xf32> -> vector<8x384xf32>
    %107 = vector.extract_strided_slice %105 {offsets = [0, 0], sizes = [8, 128], strides = [1, 1]} : vector<8x384xf32> to vector<8x128xf32>
    %108 = vector.extract_strided_slice %106 {offsets = [0, 0], sizes = [8, 128], strides = [1, 1]} : vector<8x384xf32> to vector<8x128xf32>
    %109 = arith.addf %107, %108 : vector<8x128xf32>
    %110 = arith.negf %109 : vector<8x128xf32>
    %111 = math.exp %110 : vector<8x128xf32>
    %cst_29 = arith.constant 1.000000e+00 : f32
    %112 = vector.broadcast %cst_29 : f32 to vector<8x128xf32>
    %113 = arith.addf %112, %111 : vector<8x128xf32>
    %114 = arith.divf %112, %113 : vector<8x128xf32>
    %115 = vector.extract_strided_slice %105 {offsets = [0, 128], sizes = [8, 128], strides = [1, 1]} : vector<8x384xf32> to vector<8x128xf32>
    %116 = vector.extract_strided_slice %106 {offsets = [0, 128], sizes = [8, 128], strides = [1, 1]} : vector<8x384xf32> to vector<8x128xf32>
    %117 = arith.addf %115, %116 : vector<8x128xf32>
    %118 = arith.negf %117 : vector<8x128xf32>
    %119 = math.exp %118 : vector<8x128xf32>
    %cst_30 = arith.constant 1.000000e+00 : f32
    %120 = vector.broadcast %cst_30 : f32 to vector<8x128xf32>
    %121 = arith.addf %120, %119 : vector<8x128xf32>
    %122 = arith.divf %120, %121 : vector<8x128xf32>
    %123 = vector.extract_strided_slice %105 {offsets = [0, 256], sizes = [8, 128], strides = [1, 1]} : vector<8x384xf32> to vector<8x128xf32>
    %124 = vector.extract_strided_slice %106 {offsets = [0, 256], sizes = [8, 128], strides = [1, 1]} : vector<8x384xf32> to vector<8x128xf32>
    %125 = arith.addf %124, %16 : vector<8x128xf32>
    %126 = arith.mulf %114, %125 : vector<8x128xf32>
    %127 = arith.addf %123, %126 : vector<8x128xf32>
    %128 = math.tanh %127 : vector<8x128xf32>
    %cst_31 = arith.constant 1.000000e+00 : f32
    %129 = vector.broadcast %cst_31 : f32 to vector<8x128xf32>
    %130 = arith.subf %129, %122 : vector<8x128xf32>
    %131 = arith.mulf %130, %128 : vector<8x128xf32>
    %132 = arith.mulf %122, %104 : vector<8x128xf32>
    %133 = arith.addf %131, %132 : vector<8x128xf32>
    %134 = vector.extract_strided_slice %12 {offsets = [32, 0], sizes = [8, 384], strides = [1, 1]} : vector<64x384xf32> to vector<8x384xf32>
    %cst_32 = arith.constant dense<0.000000e+00> : vector<8x384xf32>
    %135 = tpu.matmul %133, %13, %cst_32 {dimension_numbers = #tpu.dot_dimension_numbers<[1], [0], [0], [1], [0, 0, 1, 1], [], []>} : vector<8x128xf32>, vector<128x384xf32>, vector<8x384xf32> -> vector<8x384xf32>
    %136 = vector.extract_strided_slice %134 {offsets = [0, 0], sizes = [8, 128], strides = [1, 1]} : vector<8x384xf32> to vector<8x128xf32>
    %137 = vector.extract_strided_slice %135 {offsets = [0, 0], sizes = [8, 128], strides = [1, 1]} : vector<8x384xf32> to vector<8x128xf32>
    %138 = arith.addf %136, %137 : vector<8x128xf32>
    %139 = arith.negf %138 : vector<8x128xf32>
    %140 = math.exp %139 : vector<8x128xf32>
    %cst_33 = arith.constant 1.000000e+00 : f32
    %141 = vector.broadcast %cst_33 : f32 to vector<8x128xf32>
    %142 = arith.addf %141, %140 : vector<8x128xf32>
    %143 = arith.divf %141, %142 : vector<8x128xf32>
    %144 = vector.extract_strided_slice %134 {offsets = [0, 128], sizes = [8, 128], strides = [1, 1]} : vector<8x384xf32> to vector<8x128xf32>
    %145 = vector.extract_strided_slice %135 {offsets = [0, 128], sizes = [8, 128], strides = [1, 1]} : vector<8x384xf32> to vector<8x128xf32>
    %146 = arith.addf %144, %145 : vector<8x128xf32>
    %147 = arith.negf %146 : vector<8x128xf32>
    %148 = math.exp %147 : vector<8x128xf32>
    %cst_34 = arith.constant 1.000000e+00 : f32
    %149 = vector.broadcast %cst_34 : f32 to vector<8x128xf32>
    %150 = arith.addf %149, %148 : vector<8x128xf32>
    %151 = arith.divf %149, %150 : vector<8x128xf32>
    %152 = vector.extract_strided_slice %134 {offsets = [0, 256], sizes = [8, 128], strides = [1, 1]} : vector<8x384xf32> to vector<8x128xf32>
    %153 = vector.extract_strided_slice %135 {offsets = [0, 256], sizes = [8, 128], strides = [1, 1]} : vector<8x384xf32> to vector<8x128xf32>
    %154 = arith.addf %153, %16 : vector<8x128xf32>
    %155 = arith.mulf %143, %154 : vector<8x128xf32>
    %156 = arith.addf %152, %155 : vector<8x128xf32>
    %157 = math.tanh %156 : vector<8x128xf32>
    %cst_35 = arith.constant 1.000000e+00 : f32
    %158 = vector.broadcast %cst_35 : f32 to vector<8x128xf32>
    %159 = arith.subf %158, %151 : vector<8x128xf32>
    %160 = arith.mulf %159, %157 : vector<8x128xf32>
    %161 = arith.mulf %151, %133 : vector<8x128xf32>
    %162 = arith.addf %160, %161 : vector<8x128xf32>
    %163 = vector.extract_strided_slice %12 {offsets = [40, 0], sizes = [8, 384], strides = [1, 1]} : vector<64x384xf32> to vector<8x384xf32>
    %cst_36 = arith.constant dense<0.000000e+00> : vector<8x384xf32>
    %164 = tpu.matmul %162, %13, %cst_36 {dimension_numbers = #tpu.dot_dimension_numbers<[1], [0], [0], [1], [0, 0, 1, 1], [], []>} : vector<8x128xf32>, vector<128x384xf32>, vector<8x384xf32> -> vector<8x384xf32>
    %165 = vector.extract_strided_slice %163 {offsets = [0, 0], sizes = [8, 128], strides = [1, 1]} : vector<8x384xf32> to vector<8x128xf32>
    %166 = vector.extract_strided_slice %164 {offsets = [0, 0], sizes = [8, 128], strides = [1, 1]} : vector<8x384xf32> to vector<8x128xf32>
    %167 = arith.addf %165, %166 : vector<8x128xf32>
    %168 = arith.negf %167 : vector<8x128xf32>
    %169 = math.exp %168 : vector<8x128xf32>
    %cst_37 = arith.constant 1.000000e+00 : f32
    %170 = vector.broadcast %cst_37 : f32 to vector<8x128xf32>
    %171 = arith.addf %170, %169 : vector<8x128xf32>
    %172 = arith.divf %170, %171 : vector<8x128xf32>
    %173 = vector.extract_strided_slice %163 {offsets = [0, 128], sizes = [8, 128], strides = [1, 1]} : vector<8x384xf32> to vector<8x128xf32>
    %174 = vector.extract_strided_slice %164 {offsets = [0, 128], sizes = [8, 128], strides = [1, 1]} : vector<8x384xf32> to vector<8x128xf32>
    %175 = arith.addf %173, %174 : vector<8x128xf32>
    %176 = arith.negf %175 : vector<8x128xf32>
    %177 = math.exp %176 : vector<8x128xf32>
    %cst_38 = arith.constant 1.000000e+00 : f32
    %178 = vector.broadcast %cst_38 : f32 to vector<8x128xf32>
    %179 = arith.addf %178, %177 : vector<8x128xf32>
    %180 = arith.divf %178, %179 : vector<8x128xf32>
    %181 = vector.extract_strided_slice %163 {offsets = [0, 256], sizes = [8, 128], strides = [1, 1]} : vector<8x384xf32> to vector<8x128xf32>
    %182 = vector.extract_strided_slice %164 {offsets = [0, 256], sizes = [8, 128], strides = [1, 1]} : vector<8x384xf32> to vector<8x128xf32>
    %183 = arith.addf %182, %16 : vector<8x128xf32>
    %184 = arith.mulf %172, %183 : vector<8x128xf32>
    %185 = arith.addf %181, %184 : vector<8x128xf32>
    %186 = math.tanh %185 : vector<8x128xf32>
    %cst_39 = arith.constant 1.000000e+00 : f32
    %187 = vector.broadcast %cst_39 : f32 to vector<8x128xf32>
    %188 = arith.subf %187, %180 : vector<8x128xf32>
    %189 = arith.mulf %188, %186 : vector<8x128xf32>
    %190 = arith.mulf %180, %162 : vector<8x128xf32>
    %191 = arith.addf %189, %190 : vector<8x128xf32>
    %192 = vector.extract_strided_slice %12 {offsets = [48, 0], sizes = [8, 384], strides = [1, 1]} : vector<64x384xf32> to vector<8x384xf32>
    %cst_40 = arith.constant dense<0.000000e+00> : vector<8x384xf32>
    %193 = tpu.matmul %191, %13, %cst_40 {dimension_numbers = #tpu.dot_dimension_numbers<[1], [0], [0], [1], [0, 0, 1, 1], [], []>} : vector<8x128xf32>, vector<128x384xf32>, vector<8x384xf32> -> vector<8x384xf32>
    %194 = vector.extract_strided_slice %192 {offsets = [0, 0], sizes = [8, 128], strides = [1, 1]} : vector<8x384xf32> to vector<8x128xf32>
    %195 = vector.extract_strided_slice %193 {offsets = [0, 0], sizes = [8, 128], strides = [1, 1]} : vector<8x384xf32> to vector<8x128xf32>
    %196 = arith.addf %194, %195 : vector<8x128xf32>
    %197 = arith.negf %196 : vector<8x128xf32>
    %198 = math.exp %197 : vector<8x128xf32>
    %cst_41 = arith.constant 1.000000e+00 : f32
    %199 = vector.broadcast %cst_41 : f32 to vector<8x128xf32>
    %200 = arith.addf %199, %198 : vector<8x128xf32>
    %201 = arith.divf %199, %200 : vector<8x128xf32>
    %202 = vector.extract_strided_slice %192 {offsets = [0, 128], sizes = [8, 128], strides = [1, 1]} : vector<8x384xf32> to vector<8x128xf32>
    %203 = vector.extract_strided_slice %193 {offsets = [0, 128], sizes = [8, 128], strides = [1, 1]} : vector<8x384xf32> to vector<8x128xf32>
    %204 = arith.addf %202, %203 : vector<8x128xf32>
    %205 = arith.negf %204 : vector<8x128xf32>
    %206 = math.exp %205 : vector<8x128xf32>
    %cst_42 = arith.constant 1.000000e+00 : f32
    %207 = vector.broadcast %cst_42 : f32 to vector<8x128xf32>
    %208 = arith.addf %207, %206 : vector<8x128xf32>
    %209 = arith.divf %207, %208 : vector<8x128xf32>
    %210 = vector.extract_strided_slice %192 {offsets = [0, 256], sizes = [8, 128], strides = [1, 1]} : vector<8x384xf32> to vector<8x128xf32>
    %211 = vector.extract_strided_slice %193 {offsets = [0, 256], sizes = [8, 128], strides = [1, 1]} : vector<8x384xf32> to vector<8x128xf32>
    %212 = arith.addf %211, %16 : vector<8x128xf32>
    %213 = arith.mulf %201, %212 : vector<8x128xf32>
    %214 = arith.addf %210, %213 : vector<8x128xf32>
    %215 = math.tanh %214 : vector<8x128xf32>
    %cst_43 = arith.constant 1.000000e+00 : f32
    %216 = vector.broadcast %cst_43 : f32 to vector<8x128xf32>
    %217 = arith.subf %216, %209 : vector<8x128xf32>
    %218 = arith.mulf %217, %215 : vector<8x128xf32>
    %219 = arith.mulf %209, %191 : vector<8x128xf32>
    %220 = arith.addf %218, %219 : vector<8x128xf32>
    %221 = vector.extract_strided_slice %12 {offsets = [56, 0], sizes = [8, 384], strides = [1, 1]} : vector<64x384xf32> to vector<8x384xf32>
    %cst_44 = arith.constant dense<0.000000e+00> : vector<8x384xf32>
    %222 = tpu.matmul %220, %13, %cst_44 {dimension_numbers = #tpu.dot_dimension_numbers<[1], [0], [0], [1], [0, 0, 1, 1], [], []>} : vector<8x128xf32>, vector<128x384xf32>, vector<8x384xf32> -> vector<8x384xf32>
    %223 = vector.extract_strided_slice %221 {offsets = [0, 0], sizes = [8, 128], strides = [1, 1]} : vector<8x384xf32> to vector<8x128xf32>
    %224 = vector.extract_strided_slice %222 {offsets = [0, 0], sizes = [8, 128], strides = [1, 1]} : vector<8x384xf32> to vector<8x128xf32>
    %225 = arith.addf %223, %224 : vector<8x128xf32>
    %226 = arith.negf %225 : vector<8x128xf32>
    %227 = math.exp %226 : vector<8x128xf32>
    %cst_45 = arith.constant 1.000000e+00 : f32
    %228 = vector.broadcast %cst_45 : f32 to vector<8x128xf32>
    %229 = arith.addf %228, %227 : vector<8x128xf32>
    %230 = arith.divf %228, %229 : vector<8x128xf32>
    %231 = vector.extract_strided_slice %221 {offsets = [0, 128], sizes = [8, 128], strides = [1, 1]} : vector<8x384xf32> to vector<8x128xf32>
    %232 = vector.extract_strided_slice %222 {offsets = [0, 128], sizes = [8, 128], strides = [1, 1]} : vector<8x384xf32> to vector<8x128xf32>
    %233 = arith.addf %231, %232 : vector<8x128xf32>
    %234 = arith.negf %233 : vector<8x128xf32>
    %235 = math.exp %234 : vector<8x128xf32>
    %cst_46 = arith.constant 1.000000e+00 : f32
    %236 = vector.broadcast %cst_46 : f32 to vector<8x128xf32>
    %237 = arith.addf %236, %235 : vector<8x128xf32>
    %238 = arith.divf %236, %237 : vector<8x128xf32>
    %239 = vector.extract_strided_slice %221 {offsets = [0, 256], sizes = [8, 128], strides = [1, 1]} : vector<8x384xf32> to vector<8x128xf32>
    %240 = vector.extract_strided_slice %222 {offsets = [0, 256], sizes = [8, 128], strides = [1, 1]} : vector<8x384xf32> to vector<8x128xf32>
    %241 = arith.addf %240, %16 : vector<8x128xf32>
    %242 = arith.mulf %230, %241 : vector<8x128xf32>
    %243 = arith.addf %239, %242 : vector<8x128xf32>
    %244 = math.tanh %243 : vector<8x128xf32>
    %cst_47 = arith.constant 1.000000e+00 : f32
    %245 = vector.broadcast %cst_47 : f32 to vector<8x128xf32>
    %246 = arith.subf %245, %238 : vector<8x128xf32>
    %247 = arith.mulf %246, %244 : vector<8x128xf32>
    %248 = arith.mulf %238, %220 : vector<8x128xf32>
    %249 = arith.addf %247, %248 : vector<8x128xf32>
    %250 = tpu.concatenate %46, %75, %104, %133, %162, %191, %220, %249 in 0 : vector<8x128xf32>, vector<8x128xf32>, vector<8x128xf32>, vector<8x128xf32>, vector<8x128xf32>, vector<8x128xf32>, vector<8x128xf32>, vector<8x128xf32> -> vector<64x128xf32>
    %c0_48 = arith.constant 0 : index
    %c0_49 = arith.constant 0 : index
    %251 = vector.load %arg7[%c0_48, %c0_49] : memref<128x128xf32, #tpu.memory_space<vmem>>, vector<128x128xf32>
    %cst_50 = arith.constant dense<0.000000e+00> : vector<64x128xf32>
    %252 = tpu.matmul %250, %251, %cst_50 {dimension_numbers = #tpu.dot_dimension_numbers<[1], [0], [0], [1], [0, 0, 1, 1], [], []>} : vector<64x128xf32>, vector<128x128xf32>, vector<64x128xf32> -> vector<64x128xf32>
    %c0_51 = arith.constant 0 : index
    %c0_52 = arith.constant 0 : index
    %253 = vector.load %arg8[%c0_51, %c0_52] : memref<1x128xf32, #tpu.memory_space<vmem>>, vector<1x128xf32>
    %254 = vector.broadcast %253 : vector<1x128xf32> to vector<64x128xf32>
    %255 = arith.addf %252, %254 : vector<64x128xf32>
    %cst_53 = arith.constant 0.000000e+00 : f32
    %256 = vector.broadcast %cst_53 : f32 to vector<64x128xf32>
    %257 = arith.maximumf %255, %256 : vector<64x128xf32>
    %c0_54 = arith.constant 0 : index
    %c0_55 = arith.constant 0 : index
    %258 = vector.load %arg9[%c0_54, %c0_55] : memref<128x128xf32, #tpu.memory_space<vmem>>, vector<128x128xf32>
    %cst_56 = arith.constant dense<0.000000e+00> : vector<64x128xf32>
    %259 = tpu.matmul %257, %258, %cst_56 {dimension_numbers = #tpu.dot_dimension_numbers<[1], [0], [0], [1], [0, 0, 1, 1], [], []>} : vector<64x128xf32>, vector<128x128xf32>, vector<64x128xf32> -> vector<64x128xf32>
    %c0_57 = arith.constant 0 : index
    %c0_58 = arith.constant 0 : index
    %260 = vector.load %arg10[%c0_57, %c0_58] : memref<1x128xf32, #tpu.memory_space<vmem>>, vector<1x128xf32>
    %261 = vector.broadcast %260 : vector<1x128xf32> to vector<64x128xf32>
    %262 = arith.addf %259, %261 : vector<64x128xf32>
    %c0_59 = arith.constant 0 : index
    %c0_60 = arith.constant 0 : index
    %263 = vector.load %arg11[%c0_59, %c0_60] : memref<64x128xf32, #tpu.memory_space<vmem>>, vector<64x128xf32>
    tpu.vector_store %arg11[%c0_59, %c0_60], %262 {strides = array<i32>} : memref<64x128xf32, #tpu.memory_space<vmem>>, vector<64x128xf32>,
    return
  }
}

</mosaic_0001>

<bundles_post_ra>
// kernel: central_agent_forward.1
= control target key start
LH: loop header
LB: loop body
LE: loop exit
PB: predicated region body
PF: predicated region fallthrough
CT: control target
= control target key end

     0   :  { %16 = vsyncpa [#allocation3], 0  ;;  %s2730_s0 = inlined_call_operand.vmem [shape: f32[64,64], index: 0, kind: input, shape index: {}]   ;;  %s2731_s1 = inlined_call_operand.vmem [shape: f32[64,128], index: 1, kind: input, shape index: {}]   ;;  %s2732_s2 = inlined_call_operand.vmem [shape: f32[1,128], index: 2, kind: input, shape index: {}]   ;;  %s2733_s3 = inlined_call_operand.hbm [shape: f32[128,384], index: 3, kind: input, shape index: {}]   ;;  %s2734_s4 = inlined_call_operand.vmem [shape: f32[1,384], index: 4, kind: input, shape index: {}]   ;;  %s2735_s5 = inlined_call_operand.hbm [shape: f32[128,384], index: 5, kind: input, shape index: {}]   ;;  %s2736_s6 = inlined_call_operand.vmem [shape: f32[1,128], index: 6, kind: input, shape index: {}]   ;;  %s2737_s7 = inlined_call_operand.vmem [shape: f32[128,128], index: 7, kind: input, shape index: {}]   ;;  %s2738_s8 = inlined_call_operand.vmem [shape: f32[1,128], index: 8, kind: input, shape index: {}]   ;;  %s2739_s9 = inlined_call_operand.hbm [shape: f32[128,128], index: 9, kind: input, shape index: {}]   ;;  %s2740_s10 = inlined_call_operand.hbm [shape: f32[1,128], index: 10, kind: input, shape index: {}]   ;;  %s2741_s11 = inlined_call_operand.vmem [shape: f32[64,128], index: 11, kind: output, shape index: {}]  }
   0x1   :  { %17 = vsyncpa [#allocation5], 0 }
   0x2   :  { %18 = vsyncpa [#allocation8], 0  ;;  %s44_s19 = sshll.u32 %s2735_s5, 4  ;;  %s1725_s20 = smov [#allocation4]   ;;  %s45_s19 = int_to_ptr.hbm [resolvable:$true] %s44_s19 }
   0x3   :  { %s46_s21 = sshll.u32 %s1725_s20, 4  ;;  %s29_s24 = sshll.u32 %s2733_s3, 4  ;;  %s47_s21 = int_to_ptr.vmem [resolvable:$true] %s46_s21  ;;  %s30_s24 = int_to_ptr.hbm [resolvable:$true] %s29_s24 }
   0x4   :  { %s1726_s25 = smov 384   ;;  %s1727_s26 = smov 24  }
   0x5   :  { %52 = dma.hbm_to_vmem [thread:$0]  %s45_s19, 6144, %s47_s21, [#allocation5], %s1726_s25, %s1726_s25, %s1727_s26  }
   0x6   :  { %s1728_s27 = smov [#allocation2]   ;;  %s63_s12 = sshll.u32 %s2739_s9, 4  ;;  %s64_s12 = int_to_ptr.hbm [resolvable:$true] %s63_s12 }
   0x7   :  { %s31_s28 = sshll.u32 %s1728_s27, 4  ;;  %s1729_s5 = smov [#allocation6]   ;;  %s32_s28 = int_to_ptr.vmem [resolvable:$true] %s31_s28 }
   0x8   :  { %37 = dma.hbm_to_vmem [thread:$0]  %s30_s24, 6144, %s32_s28, [#allocation3], %s1726_s25, %s1726_s25, %s1727_s26  }
   0x9   :  { %s65_s13 = sshll.u32 %s1729_s5, 4  ;;  %s77_s3 = sshll.u32 %s2740_s10, 4  ;;  %s66_s13 = int_to_ptr.vmem [resolvable:$true] %s65_s13  ;;  %s78_s3 = int_to_ptr.hbm [resolvable:$true] %s77_s3 }
   0xa   :  { %s1730_s16 = smov 128   ;;  %s1731_s17 = smov 8  }
   0xb   :  { %71 = dma.hbm_to_vmem [thread:$0]  %s64_s12, 2048, %s66_s13, [#allocation5], %s1730_s16, %s1730_s16, %s1731_s17  }
   0xc   :  { %s1732_s18 = smov [#allocation7]  }
   0xd   :  { %s79_s19 = sshll.u32 %s1732_s18, 4  ;;  %s80_s19 = int_to_ptr.vmem [resolvable:$true] %s79_s19 }
   0xe   :  { %82 = dma.hbm_to_vmem [thread:$0]  %s78_s3, 16, %s80_s19, [#allocation8]  }
   0xf   :  { %1719 = dma.done.wait [#allocation3], 6144  }
  0x10   :  { %1720 = vsyncadd [#allocation3], 4294961152 }
  0x11   :  { %1721 = dma.done.wait [#allocation5], 8192  }
  0x12   :  { %1722 = vsyncadd [#allocation5], 4294959104 }
  0x13   :  { %1723 = dma.done.wait [#allocation8], 16  }
  0x14   :  { %1724 = vsyncadd [#allocation8], 4294967280  ;;  %v114_v0 = vld [vmem:[%s2731_s1 + $0x38] sm:$0xff]  ;;  %v113_v1 = vld [vmem:[%s2731_s1 + $0x30] sm:$0xff]  ;;  %vm119_vm0 = vcmask 523264   ;;  %v1733_v59 = vmov 0.0  }
  0x15   :  { %152 = vmatpush.msra.mxu0 %v114_v0  ;;  %1457 = vmatpush.msra.mxu1 %v114_v0  ;;  %v112_v2 = vld [vmem:[%s2731_s1 + $0x28] sm:$0xff]  ;;  %v111_v3 = vld [vmem:[%s2731_s1 + $0x20] sm:$0xff]  ;;  %v110_v4 = vld [vmem:[%s2731_s1 + $0x18] sm:$0xff] }
  0x16   :  { %v109_v5 = vld [vmem:[%s2731_s1 + $0x10] sm:$0xff]  ;;  %v238_v6 = vld [vmem:[#allocation2 + $0x168] sm:$0xff]  ;;  %v232_v9 = vld [vmem:[#allocation2 + $0x138] sm:$0xff] }
  0x17   :  { %153 = vmatpush.msra.mxu0 %v113_v1  ;;  %1458 = vmatpush.msra.mxu1 %v113_v1  ;;  %v235_v7 = vld [vmem:[#allocation2 + $0x150] sm:$0xff]  ;;  %v108_v8 = vld [vmem:[%s2731_s1 + $0x8] sm:$0xff]  ;;  %v107_v10 = vld [vmem:[%s2731_s1] sm:$0xff] }
  0x18   :  { %249 = vmatpush.msra.mxu2 %v238_v6  ;;  %1465 = vmatpush.msra.mxu3 %v238_v6  ;;  %v99_v11 = vld [vmem:[%s2730_s0] sm:$0xff]  ;;  %v1836_v14 = vld [vmem:[#allocation4 + $0x168] sm:$0xff]  ;;  %v1840_v16 = vld [vmem:[#allocation4 + $0x150] sm:$0xff] }
  0x19   :  { %154 = vmatpush.msra.mxu0 %v112_v2  ;;  %1459 = vmatpush.msra.mxu1 %v112_v2  ;;  %v103_v12 = vld [vmem:[%s2730_s0 + $0x20] sm:$0xff]  ;;  %v226_v15 = vld [vmem:[#allocation2 + $0x108] sm:$0xff]  ;;  %v223_v17 = vld [vmem:[#allocation2 + $0xf0] sm:$0xff] }
  0x1a   :  { %250 = vmatpush.msra.mxu2 %v235_v7  ;;  %1466 = vmatpush.msra.mxu3 %v235_v7  ;;  %v229_v13 = vld [vmem:[#allocation2 + $0x120] sm:$0xff]  ;;  %v1843_v18 = vld [vmem:[#allocation4 + $0x138] sm:$0xff]  ;;  %v100_v20 = vld [vmem:[%s2730_s0 + $0x8] sm:$0xff] }
  0x1b   :  { %155 = vmatpush.msra.mxu0 %v111_v3  ;;  %1460 = vmatpush.msra.mxu1 %v111_v3  ;;  %v220_v19 = vld [vmem:[#allocation2 + $0xd8] sm:$0xff]  ;;  %v104_v21 = vld [vmem:[%s2730_s0 + $0x28] sm:$0xff]  ;;  %v217_v22 = vld [vmem:[#allocation2 + $0xc0] sm:$0xff] }
  0x1c   :  { %251 = vmatpush.msra.mxu2 %v232_v9  ;;  %1467 = vmatpush.msra.mxu3 %v232_v9  ;;  %v1853_v23 = vld [vmem:[#allocation4 + $0x120] sm:$0xff]  ;;  %v214_v24 = vld [vmem:[#allocation2 + $0xa8] sm:$0xff]  ;;  %v211_v26 = vld [vmem:[#allocation2 + $0x90] sm:$0xff] }
  0x1d   :  { %156 = vmatpush.msra.mxu0 %v110_v4  ;;  %1461 = vmatpush.msra.mxu1 %v110_v4  ;;  %v1857_v25 = vld [vmem:[#allocation4 + $0x108] sm:$0xff]  ;;  %v1860_v27 = vld [vmem:[#allocation4 + $0xf0] sm:$0xff]  ;;  %v208_v28 = vld [vmem:[#allocation2 + $0x78] sm:$0xff] }
  0x1e   :  { %252 = vmatpush.msra.mxu2 %v229_v13  ;;  %1468 = vmatpush.msra.mxu3 %v229_v13  ;;  %v101_v29 = vld [vmem:[%s2730_s0 + $0x10] sm:$0xff]  ;;  %v1870_v31 = vld [vmem:[#allocation4 + $0xd8] sm:$0xff]  ;;  %v205_v32 = vld [vmem:[#allocation2 + $0x60] sm:$0xff] }
  0x1f   :  { %157 = vmatpush.msra.mxu0 %v109_v5  ;;  %1462 = vmatpush.msra.mxu1 %v109_v5  ;;  %v105_v30 = vld [vmem:[%s2730_s0 + $0x30] sm:$0xff]  ;;  %v1874_v33 = vld [vmem:[#allocation4 + $0xc0] sm:$0xff]  ;;  %v202_v34 = vld [vmem:[#allocation2 + $0x48] sm:$0xff] }
  0x20   :  { %253 = vmatpush.msra.mxu2 %v226_v15  ;;  %1469 = vmatpush.msra.mxu3 %v226_v15  ;;  %v1877_v35 = vld [vmem:[#allocation4 + $0xa8] sm:$0xff]  ;;  %v102_v36 = vld [vmem:[%s2730_s0 + $0x18] sm:$0xff]  ;;  %v199_v38 = vld [vmem:[#allocation2 + $0x30] sm:$0xff] }
  0x21   :  { %158 = vmatpush.msra.mxu0 %v108_v8  ;;  %1463 = vmatpush.msra.mxu1 %v108_v8  ;;  %v106_v37 = vld [vmem:[%s2730_s0 + $0x38] sm:$0xff]  ;;  %v1889_v39 = vld [vmem:[#allocation4 + $0x90] sm:$0xff]  ;;  %v193_v42 = vld [vmem:[#allocation2] sm:$0xff] }
  0x22   :  { %254 = vmatpush.msra.mxu2 %v223_v17  ;;  %1470 = vmatpush.msra.mxu3 %v223_v17  ;;  %v196_v40 = vld [vmem:[#allocation2 + $0x18] sm:$0xff]  ;;  %v1895_v43 = vld [vmem:[#allocation4 + $0x60] sm:$0xff]  ;;  %v239_v44 = vld [vmem:[#allocation2 + $0x170] sm:$0xff] }
  0x23   :  { %159 = vmatpush.msra.mxu0 %v107_v10  ;;  %1464 = vmatpush.msra.mxu1 %v107_v10  ;;  %v1892_v41 = vld [vmem:[#allocation4 + $0x78] sm:$0xff]  ;;  %v1898_v46 = vld [vmem:[#allocation4 + $0x48] sm:$0xff]  ;;  %v237_v48 = vld [vmem:[#allocation2 + $0x160] sm:$0xff] }
  0x24   :  { %1433 = vmatmul.msk.f32.vlgmr.msra.gmra.mxu0 %vm119_vm0, %v99_v11  ;;  %1437 = vmatmul.msk.f32.vlgmr.msra.gmra.mxu1 %vm119_vm0, %v103_v12  ;;  %v240_v45 = vld [vmem:[#allocation2 + $0x178] sm:$0xff]  ;;  %v1901_v49 = vld [vmem:[#allocation4 + $0x30] sm:$0xff]  ;;  %v233_v50 = vld [vmem:[#allocation2 + $0x140] sm:$0xff] }
  0x25   :  { %424 = vmatpush.msrb.mxu0 %v1836_v14  ;;  %255 = vmatpush.msra.mxu2 %v220_v19  ;;  %v236_v47 = vld [vmem:[#allocation2 + $0x158] sm:$0xff]  ;;  %v234_v51 = vld [vmem:[#allocation2 + $0x148] sm:$0xff]  ;;  %v231_v54 = vld [vmem:[#allocation2 + $0x130] sm:$0xff] }
  0x26   :  { %1471 = vmatpush.msra.mxu3 %v220_v19  ;;  %v1904_v52 = vld [vmem:[#allocation4 + $0x18] sm:$0xff]  ;;  %v230_v53 = vld [vmem:[#allocation2 + $0x128] sm:$0xff]  ;;  %v1907_v55 = vld [vmem:[#allocation4] sm:$0xff] }
  0x27   :  { %425 = vmatpush.msrb.mxu0 %v1840_v16  ;;  %256 = vmatpush.msra.mxu2 %v217_v22  ;;  %2754 = vst [vmem:[#allocation12_spill] sm:$0xff] %v1904_v52  ;;  %v227_v56 = vld [vmem:[#allocation2 + $0x110] sm:$0xff]  ;;  %v228_v57 = vld [vmem:[#allocation2 + $0x118] sm:$0xff]  ;;  %v225_v61 = vld [vmem:[#allocation2 + $0x100] sm:$0xff] }
  0x28   :  { %1472 = vmatpush.msra.mxu3 %v217_v22  ;;  %2755 = vst [vmem:[#allocation13_spill] sm:$0xff] %v1907_v55  ;;  %v1910_v58 = vld [vmem:[#allocation4 + $0x170] sm:$0xff]  ;;  %v224_v60 = vld [vmem:[#allocation2 + $0xf8] sm:$0xff]  ;;  %v221_v63 = vld [vmem:[#allocation2 + $0xe0] sm:$0xff] }
  0x29   :  { %426 = vmatpush.msrb.mxu0 %v1843_v18  ;;  %257 = vmatpush.msra.mxu2 %v214_v24  ;;  %v1914_v62 = vld [vmem:[#allocation4 + $0x158] sm:$0xff]  ;;  %v222_v0 = vld [vmem:[#allocation2 + $0xe8] sm:$0xff]  ;;  %v1918_v1 = vld [vmem:[#allocation4 + $0x140] sm:$0xff] }
  0x2a   :  { %1473 = vmatpush.msra.mxu3 %v214_v24  ;;  %444 = vmatpush.msrb.mxu1 %v1910_v58  ;;  %v218_v2 = vld [vmem:[#allocation2 + $0xc8] sm:$0xff]  ;;  %v219_v3 = vld [vmem:[#allocation2 + $0xd0] sm:$0xff]  ;;  %v216_v6 = vld [vmem:[#allocation2 + $0xb8] sm:$0xff] }
  0x2b   :  { %427 = vmatpush.msrb.mxu0 %v1853_v23  ;;  %258 = vmatpush.msra.mxu2 %v211_v26  ;;  %v1922_v4 = vld [vmem:[#allocation4 + $0x128] sm:$0xff]  ;;  %v215_v5 = vld [vmem:[#allocation2 + $0xb0] sm:$0xff]  ;;  %v212_v8 = vld [vmem:[#allocation2 + $0x98] sm:$0xff] }
  0x2c   :  { %1434 = vmatmul.msk.f32.gmra.mxu0 %vm119_vm0, %v100_v20  ;;  %1438 = vmatmul.msk.f32.gmra.mxu1 %vm119_vm0, %v104_v21  ;;  %v1926_v7 = vld [vmem:[#allocation4 + $0x110] sm:$0xff]  ;;  %v213_v9 = vld [vmem:[#allocation2 + $0xa0] sm:$0xff]  ;;  %v1930_v10 = vld [vmem:[#allocation4 + $0xf8] sm:$0xff] }
  0x2d   :  { %428 = vmatpush.msrb.mxu0 %v1857_v25  ;;  %1474 = vmatpush.msra.mxu3 %v211_v26  ;;  %v209_v11 = vld [vmem:[#allocation2 + $0x80] sm:$0xff]  ;;  %v210_v12 = vld [vmem:[#allocation2 + $0x88] sm:$0xff]  ;;  %v207_v17 = vld [vmem:[#allocation2 + $0x70] sm:$0xff] }
  0x2e   :  { %259 = vmatpush.msra.mxu2 %v208_v28  ;;  %445 = vmatpush.msrb.mxu1 %v1914_v62  ;;  %v1934_v13 = vld [vmem:[#allocation4 + $0xe0] sm:$0xff]  ;;  %v206_v15 = vld [vmem:[#allocation2 + $0x68] sm:$0xff]  ;;  %v203_v21 = vld [vmem:[#allocation2 + $0x50] sm:$0xff] }
  0x2f   :  { %429 = vmatpush.msrb.mxu0 %v1860_v27  ;;  %1475 = vmatpush.msra.mxu3 %v208_v28  ;;  %v1938_v19 = vld [vmem:[#allocation4 + $0xc8] sm:$0xff]  ;;  %v1943_v20 = vld [vmem:[%s2732_s2] ss:$0 sm:$0xff]  ;;  %v204_v22 = vld [vmem:[#allocation2 + $0x58] sm:$0xff] }
  0x30   :  { %260 = vmatpush.msra.mxu2 %v205_v32  ;;  %446 = vmatpush.msrb.mxu1 %v1918_v1  ;;  %v1947_v24 = vld [vmem:[#allocation4 + $0xb0] sm:$0xff]  ;;  %v200_v26 = vld [vmem:[#allocation2 + $0x38] sm:$0xff]  ;;  %v201_v28 = vld [vmem:[#allocation2 + $0x40] sm:$0xff] }
  0x31   :  { %430 = vmatpush.msrb.mxu0 %v1870_v31  ;;  %1476 = vmatpush.msra.mxu3 %v205_v32 }
  0x32   :  { %261 = vmatpush.msra.mxu2 %v202_v34  ;;  %447 = vmatpush.msrb.mxu1 %v1922_v4 }
  0x33   :  { %431 = vmatpush.msrb.mxu0 %v1874_v33  ;;  %1477 = vmatpush.msra.mxu3 %v202_v34 }
  0x34   :  { %1435 = vmatmul.msk.f32.gmra.mxu0 %vm119_vm0, %v101_v29  ;;  %1439 = vmatmul.msk.f32.gmra.mxu1 %vm119_vm0, %v105_v30  ;;  %v1949_v29 = vld [vmem:[#allocation4 + $0x98] sm:$0xff]  ;;  %v197_v30 = vld [vmem:[#allocation2 + $0x20] sm:$0xff] }
  0x35   :  { %432 = vmatpush.msrb.mxu0 %v1877_v35  ;;  %262 = vmatpush.msra.mxu2 %v199_v38 }
  0x36   :  { %1478 = vmatpush.msra.mxu3 %v199_v38  ;;  %448 = vmatpush.msrb.mxu1 %v1926_v7 }
  0x37   :  { %433 = vmatpush.msrb.mxu0 %v1889_v39  ;;  %263 = vmatpush.msra.mxu2 %v196_v40 }
  0x38   :  { %1479 = vmatpush.msra.mxu3 %v196_v40  ;;  %449 = vmatpush.msrb.mxu1 %v1930_v10 }
  0x39   :  { %434 = vmatpush.msrb.mxu0 %v1892_v41  ;;  %264 = vmatpush.msra.mxu2 %v193_v42 }
  0x3a   :  { %1480 = vmatpush.msra.mxu3 %v193_v42  ;;  %450 = vmatpush.msrb.mxu1 %v1934_v13  ;;  %v194_v42 = vld [vmem:[#allocation2 + $0x8] sm:$0xff] }
  0x3b   :  { %435 = vmatpush.msrb.mxu0 %v1895_v43  ;;  %290 = vmatpush.msrb.mxu2 %v239_v44 }
  0x3c   :  { %1436 = vmatmul.msk.f32.gmra.mxu0 %vm119_vm0, %v102_v36  ;;  %1440 = vmatmul.msk.f32.gmra.mxu1 %vm119_vm0, %v106_v37  ;;  %v198_v36 = vld [vmem:[#allocation2 + $0x28] sm:$0xff]  ;;  %v1953_v37 = vld [vmem:[#allocation4 + $0x80] sm:$0xff] }
  0x3d   :  { %331 = vmatpush.msrb.mxu3 %v240_v45  ;;  %436 = vmatpush.msrb.mxu0 %v1898_v46 }
  0x3e   :  { %291 = vmatpush.msrb.mxu2 %v236_v47  ;;  %451 = vmatpush.msrb.mxu1 %v1938_v19  ;;  %v195_v47 = vld [vmem:[#allocation2 + $0x10] sm:$0xff] }
  0x3f   :  { %332 = vmatpush.msrb.mxu3 %v237_v48  ;;  %437 = vmatpush.msrb.mxu0 %v1901_v49  ;;  %v1965_v48 = vld [vmem:[#allocation4 + $0x68] sm:$0xff] }
  0x40   :  { %292 = vmatpush.msrb.mxu2 %v233_v50  ;;  %452 = vmatpush.msrb.mxu1 %v1947_v24  ;;  %v1970_v50 = vld [vmem:[#allocation4 + $0x178] sm:$0xff] }
  0x41   :  { %333 = vmatpush.msrb.mxu3 %v234_v51  ;;  %438 = vmatpush.msrb.mxu0 %v1904_v52  ;;  %v1972_v51 = vld [vmem:[#allocation4 + $0x50] sm:$0xff] }
  0x42   :  { %293 = vmatpush.msrb.mxu2 %v230_v53  ;;  %453 = vmatpush.msrb.mxu1 %v1949_v29  ;;  %v1975_v53 = vld [vmem:[#allocation4 + $0x160] sm:$0xff] }
  0x43   :  { %334 = vmatpush.msrb.mxu3 %v231_v54  ;;  %439 = vmatpush.msrb.mxu0 %v1907_v55  ;;  %v1978_v54 = vld [vmem:[#allocation4 + $0x38] sm:$0xff] }
  0x44   :  { %294 = vmatpush.msrb.mxu2 %v227_v56  ;;  %440 = vmatmul.f32.vlgmr.msrb.gmra.mxu0 %v1733_v59  ;;  %2756 = vst [vmem:[#allocation14_spill] sm:$0xff] %v1978_v54 }
  0x45   :  { %335 = vmatpush.msrb.mxu3 %v228_v57  ;;  %552 = vmatpush.msra.mxu0 %v1910_v58 }
  0x46   :  { %295 = vmatpush.msrb.mxu2 %v224_v60  ;;  %454 = vmatpush.msrb.mxu1 %v1953_v37 }
  0x47   :  { %336 = vmatpush.msrb.mxu3 %v225_v61  ;;  %553 = vmatpush.msra.mxu0 %v1914_v62 }
  0x48   :  { %296 = vmatpush.msrb.mxu2 %v221_v63  ;;  %455 = vmatpush.msrb.mxu1 %v1965_v48  ;;  %v1986_v63 = vld [vmem:[#allocation4 + $0x20] sm:$0xff] }
  0x49   :  { %337 = vmatpush.msrb.mxu3 %v222_v0  ;;  %554 = vmatpush.msra.mxu0 %v1918_v1  ;;  %2757 = vst [vmem:[#allocation15_spill] sm:$0xff] %v1986_v63 }
  0x4a   :  { %297 = vmatpush.msrb.mxu2 %v218_v2  ;;  %456 = vmatpush.msrb.mxu1 %v1972_v51 }
  0x4b   :  { %338 = vmatpush.msrb.mxu3 %v219_v3  ;;  %555 = vmatpush.msra.mxu0 %v1922_v4  ;;  %v1995_v3 = vld [vmem:[#allocation4 + $0x8] sm:$0xff] }
  0x4c   :  { %298 = vmatpush.msrb.mxu2 %v215_v5  ;;  %457 = vmatpush.msrb.mxu1 %v1978_v54  ;;  %2758 = vst [vmem:[#allocation16_spill] sm:$0xff] %v1995_v3  ;;  %v2002_v5 = vld [vmem:[#allocation4 + $0x148] sm:$0xff] }
  0x4d   :  { %339 = vmatpush.msrb.mxu3 %v216_v6  ;;  %556 = vmatpush.msra.mxu0 %v1926_v7  ;;  %v2004_v6 = vld [vmem:[#allocation4 + $0x130] sm:$0xff] }
  0x4e   :  { %299 = vmatpush.msrb.mxu2 %v212_v8  ;;  %458 = vmatpush.msrb.mxu1 %v1986_v63 }
  0x4f   :  { %340 = vmatpush.msrb.mxu3 %v213_v9  ;;  %557 = vmatpush.msra.mxu0 %v1930_v10 }
  0x50   :  { %300 = vmatpush.msrb.mxu2 %v209_v11  ;;  %459 = vmatpush.msrb.mxu1 %v1995_v3 }
  0x51   :  { %341 = vmatpush.msrb.mxu3 %v210_v12  ;;  %558 = vmatpush.msra.mxu0 %v1934_v13 }
  0x52   :  { %301 = vmatpush.msrb.mxu2 %v206_v15  ;;  %460 = vmatmul.f32.vlgmr.msrb.gmra.mxu1 %v1733_v59 }
  0x53   :  { %342 = vmatpush.msrb.mxu3 %v207_v17  ;;  %559 = vmatpush.msra.mxu0 %v1938_v19 }
  0x54   :  { %302 = vmatpush.msrb.mxu2 %v203_v21  ;;  %572 = vmatpush.msra.mxu1 %v1970_v50  ;;  %v2027_v21 = vld [vmem:[#allocation4 + $0x118] sm:$0xff] }
  0x55   :  { %343 = vmatpush.msrb.mxu3 %v204_v22  ;;  %560 = vmatpush.msra.mxu0 %v1947_v24  ;;  %v2029_v22 = vld [vmem:[#allocation4 + $0x100] sm:$0xff] }
  0x56   :  { %303 = vmatpush.msrb.mxu2 %v200_v26  ;;  %573 = vmatpush.msra.mxu1 %v1975_v53 }
  0x57   :  { %344 = vmatpush.msrb.mxu3 %v201_v28  ;;  %561 = vmatpush.msra.mxu0 %v1949_v29 }
  0x58   :  { %304 = vmatpush.msrb.mxu2 %v197_v30  ;;  %574 = vmatpush.msra.mxu1 %v2002_v5 }
  0x59   :  { %345 = vmatpush.msrb.mxu3 %v198_v36  ;;  %562 = vmatpush.msra.mxu0 %v1953_v37 }
  0x5a   :  { %305 = vmatpush.msrb.mxu2 %v194_v42  ;;  %575 = vmatpush.msra.mxu1 %v2004_v6  ;;  %v2067_v42 = vld [vmem:[#allocation4 + $0xa0] sm:$0xff] }
  0x5b   :  { %346 = vmatpush.msrb.mxu3 %v195_v47  ;;  %563 = vmatpush.msra.mxu0 %v1965_v48  ;;  %v2084_v47 = vld [vmem:[#allocation4 + $0x70] sm:$0xff] }
  0x5c   :  { %576 = vmatpush.msra.mxu1 %v2027_v21 }
  0x5d   :  { %564 = vmatpush.msra.mxu0 %v1972_v51 }
  0x5e   :  { %577 = vmatpush.msra.mxu1 %v2029_v22 }
  0x5f   :  { %565 = vmatpush.msra.mxu0 %v1978_v54 }
  0x61   :  { %566 = vmatpush.msra.mxu0 %v1986_v63 }
  0x63   :  { %567 = vmatpush.msra.mxu0 %v1995_v3 }
  0x65   :  { %680 = vmatpush.msrb.mxu0 %v1970_v50 }
  0x67   :  { %681 = vmatpush.msrb.mxu0 %v1975_v53 }
  0x69   :  { %682 = vmatpush.msrb.mxu0 %v2002_v5 }
  0x6b   :  { %683 = vmatpush.msrb.mxu0 %v2004_v6 }
  0x6d   :  { %684 = vmatpush.msrb.mxu0 %v2027_v21 }
  0x6f   :  { %685 = vmatpush.msrb.mxu0 %v2029_v22 }
  0xa1   :  { %v161_v32 = vpop.f32.mrf.mxu0  ;;  %v173_v34 = vpop.f32.mrf.mxu1 }
  0xa2   :  { %v162_v38 = vadd.f32 %v1943_v20, %v161_v32  ;;  %v174_v40 = vadd.f32 %v1943_v20, %v173_v34 }
  0xa4   :  { %v1960_v44 = vmax.f32 %v162_v38, 0.0  ;;  %v1962_v45 = vmax.f32 %v174_v40, 0.0  ;;  %v2048_v38 = vld [vmem:[#allocation4 + $0xe8] sm:$0xff]  ;;  %v2065_v40 = vld [vmem:[#allocation4 + $0xb8] sm:$0xff] }
  0xa5   :  { %578 = vmatpush.msra.mxu1 %v2048_v38  ;;  %686 = vmatpush.msrb.mxu0 %v2048_v38 }
  0xa6   :  { %265 = vmatmul.f32.vlgmr.msra.gmra.mxu2 %v1960_v44  ;;  %277 = vmatmul.f32.vlgmr.msra.gmra.mxu3 %v1962_v45 }
  0xa7   :  { %464 = vmatpush.msra.mxu2 %v1970_v50  ;;  %532 = vmatpush.msra.mxu3 %v1836_v14 }
  0xa9   :  { %v164_v56 = vpop.f32.mrf.mxu0  ;;  %v176_v57 = vpop.f32.mrf.mxu1  ;;  %465 = vmatpush.msra.mxu2 %v1975_v53  ;;  %533 = vmatpush.msra.mxu3 %v1840_v16 }
  0xaa   :  { %v165_v60 = vadd.f32 %v1943_v20, %v164_v56  ;;  %v177_v61 = vadd.f32 %v1943_v20, %v176_v57  ;;  %v2097_v56 = vld [vmem:[#allocation4 + $0x58] sm:$0xff]  ;;  %v2099_v57 = vld [vmem:[#allocation4 + $0x40] sm:$0xff] }
  0xab   :  { %534 = vmatpush.msra.mxu3 %v1843_v18  ;;  %466 = vmatpush.msra.mxu2 %v2002_v5 }
  0xac   :  { %v1991_v0 = vmax.f32 %v165_v60, 0.0  ;;  %v1993_v2 = vmax.f32 %v177_v61, 0.0  ;;  %v2110_v60 = vld [vmem:[#allocation4 + $0x28] sm:$0xff]  ;;  %v2112_v61 = vld [vmem:[#allocation4 + $0x10] sm:$0xff] }
  0xad   :  { %535 = vmatpush.msra.mxu3 %v1853_v23  ;;  %467 = vmatpush.msra.mxu2 %v2004_v6  ;;  %2759 = vst [vmem:[#allocation17_spill] sm:$0xff] %v2110_v60 }
  0xae   :  { %268 = vmatmul.f32.gmra.mxu2 %v1991_v0  ;;  %280 = vmatmul.f32.gmra.mxu3 %v1993_v2  ;;  %2760 = vst [vmem:[#allocation18_spill] sm:$0xff] %v2112_v61 }
  0xaf   :  { %536 = vmatpush.msra.mxu3 %v1857_v25  ;;  %468 = vmatpush.msra.mxu2 %v2027_v21 }
  0xb1   :  { %v167_v8 = vpop.f32.mrf.mxu0  ;;  %v179_v9 = vpop.f32.mrf.mxu1  ;;  %537 = vmatpush.msra.mxu3 %v1860_v27  ;;  %469 = vmatpush.msra.mxu2 %v2029_v22 }
  0xb2   :  { %v168_v11 = vadd.f32 %v1943_v20, %v167_v8  ;;  %v180_v12 = vadd.f32 %v1943_v20, %v179_v9 }
  0xb3   :  { %538 = vmatpush.msra.mxu3 %v1870_v31  ;;  %470 = vmatpush.msra.mxu2 %v2048_v38 }
  0xb4   :  { %v2017_v15 = vmax.f32 %v168_v11, 0.0  ;;  %v2019_v17 = vmax.f32 %v180_v12, 0.0 }
  0xb5   :  { %539 = vmatpush.msra.mxu3 %v1874_v33 }
  0xb6   :  { %271 = vmatmul.f32.gmra.mxu2 %v2017_v15  ;;  %283 = vmatmul.f32.gmra.mxu3 %v2019_v17 }
  0xb7   :  { %540 = vmatpush.msra.mxu3 %v1877_v35 }
  0xb9   :  { %v170_v26 = vpop.f32.mrf.mxu0  ;;  %v182_v28 = vpop.f32.mrf.mxu1  ;;  %541 = vmatpush.msra.mxu3 %v1889_v39 }
  0xba   :  { %v171_v30 = vadd.f32 %v1943_v20, %v170_v26  ;;  %v183_v32 = vadd.f32 %v1943_v20, %v182_v28  ;;  %v2050_v20 = vld [vmem:[#allocation4 + $0xd0] sm:$0xff] }
  0xbb   :  { %542 = vmatpush.msra.mxu3 %v1892_v41  ;;  %471 = vmatpush.msra.mxu2 %v2050_v20 }
  0xbc   :  { %v188_v34 = vmax.f32 %v171_v30, 0.0  ;;  %v2042_v36 = vmax.f32 %v183_v32, 0.0  ;;  %579 = vmatpush.msra.mxu1 %v2050_v20  ;;  %687 = vmatpush.msrb.mxu0 %v2050_v20 }
  0xbd   :  { %543 = vmatpush.msra.mxu3 %v1895_v43  ;;  %472 = vmatpush.msra.mxu2 %v2065_v40 }
  0xbe   :  { %274 = vmatmul.f32.gmra.mxu2 %v188_v34  ;;  %286 = vmatmul.f32.gmra.mxu3 %v2042_v36 }
  0xbf   :  { %544 = vmatpush.msra.mxu3 %v1898_v46  ;;  %580 = vmatpush.msra.mxu1 %v2065_v40 }
  0xc0   :  { %473 = vmatpush.msra.mxu2 %v2067_v42  ;;  %688 = vmatpush.msrb.mxu0 %v2065_v40 }
  0xc1   :  { %545 = vmatpush.msra.mxu3 %v1901_v49  ;;  %581 = vmatpush.msra.mxu1 %v2067_v42 }
  0xc2   :  { %689 = vmatpush.msrb.mxu0 %v2067_v42 }
  0xc3   :  { %546 = vmatpush.msra.mxu3 %v1904_v52 }
  0xc5   :  { %547 = vmatpush.msra.mxu3 %v1907_v55 }
  0xc6   :  { %306 = vmatmul.f32.vlgmr.msrb.gmra.mxu2 %v1960_v44  ;;  %347 = vmatmul.f32.vlgmr.msrb.gmra.mxu3 %v1960_v44  ;;  %v2082_v44 = vld [vmem:[#allocation4 + $0x88] sm:$0xff] }
  0xc7   :  { %660 = vmatpush.msrb.mxu3 %v1910_v58  ;;  %474 = vmatpush.msra.mxu2 %v2082_v44 }
  0xc8   :  { %582 = vmatpush.msra.mxu1 %v2082_v44  ;;  %690 = vmatpush.msrb.mxu0 %v2082_v44 }
  0xc9   :  { %661 = vmatpush.msrb.mxu3 %v1914_v62  ;;  %475 = vmatpush.msra.mxu2 %v2084_v47 }
  0xca   :  { %583 = vmatpush.msra.mxu1 %v2084_v47  ;;  %691 = vmatpush.msrb.mxu0 %v2084_v47 }
  0xcb   :  { %662 = vmatpush.msrb.mxu3 %v1918_v1  ;;  %476 = vmatpush.msra.mxu2 %v2097_v56 }
  0xcc   :  { %584 = vmatpush.msra.mxu1 %v2097_v56  ;;  %692 = vmatpush.msrb.mxu0 %v2097_v56 }
  0xcd   :  { %663 = vmatpush.msrb.mxu3 %v1922_v4  ;;  %477 = vmatpush.msra.mxu2 %v2099_v57 }
  0xce   :  { %309 = vmatmul.f32.gmra.mxu2 %v1991_v0  ;;  %350 = vmatmul.f32.gmra.mxu3 %v1991_v0 }
  0xcf   :  { %664 = vmatpush.msrb.mxu3 %v1926_v7  ;;  %585 = vmatpush.msra.mxu1 %v2099_v57 }
  0xd0   :  { %693 = vmatpush.msrb.mxu0 %v2099_v57  ;;  %478 = vmatpush.msra.mxu2 %v2110_v60 }
  0xd1   :  { %665 = vmatpush.msrb.mxu3 %v1930_v10  ;;  %586 = vmatpush.msra.mxu1 %v2110_v60 }
  0xd2   :  { %694 = vmatpush.msrb.mxu0 %v2110_v60  ;;  %479 = vmatpush.msra.mxu2 %v2112_v61 }
  0xd3   :  { %666 = vmatpush.msrb.mxu3 %v1934_v13  ;;  %587 = vmatpush.msra.mxu1 %v2112_v61 }
  0xd4   :  { %640 = vmatpush.msrb.mxu2 %v1836_v14  ;;  %695 = vmatpush.msrb.mxu0 %v2112_v61 }
  0xd5   :  { %667 = vmatpush.msrb.mxu3 %v1938_v19  ;;  %748 = vmatpush.msrb.mxu1 %v1836_v14 }
  0xd6   :  { %312 = vmatmul.f32.gmra.mxu2 %v2017_v15  ;;  %353 = vmatmul.f32.gmra.mxu3 %v2017_v15 }
  0xd7   :  { %668 = vmatpush.msrb.mxu3 %v1947_v24  ;;  %641 = vmatpush.msrb.mxu2 %v1840_v16 }
  0xd8   :  { %749 = vmatpush.msrb.mxu1 %v1840_v16 }
  0xd9   :  { %669 = vmatpush.msrb.mxu3 %v1949_v29  ;;  %642 = vmatpush.msrb.mxu2 %v1843_v18 }
  0xda   :  { %750 = vmatpush.msrb.mxu1 %v1843_v18 }
  0xdb   :  { %670 = vmatpush.msrb.mxu3 %v1953_v37  ;;  %643 = vmatpush.msrb.mxu2 %v1853_v23 }
  0xdc   :  { %751 = vmatpush.msrb.mxu1 %v1853_v23 }
  0xdd   :  { %671 = vmatpush.msrb.mxu3 %v1965_v48  ;;  %644 = vmatpush.msrb.mxu2 %v1857_v25 }
  0xde   :  { %315 = vmatmul.f32.gmra.mxu2 %v188_v34  ;;  %356 = vmatmul.f32.gmra.mxu3 %v188_v34 }
  0xdf   :  { %672 = vmatpush.msrb.mxu3 %v1972_v51  ;;  %752 = vmatpush.msrb.mxu1 %v1857_v25 }
  0xe0   :  { %645 = vmatpush.msrb.mxu2 %v1860_v27 }
  0xe1   :  { %673 = vmatpush.msrb.mxu3 %v1978_v54  ;;  %753 = vmatpush.msrb.mxu1 %v1860_v27 }
  0xe2   :  { %646 = vmatpush.msrb.mxu2 %v1870_v31 }
  0xe3   :  { %674 = vmatpush.msrb.mxu3 %v1986_v63  ;;  %754 = vmatpush.msrb.mxu1 %v1870_v31 }
  0xe4   :  { %647 = vmatpush.msrb.mxu2 %v1874_v33 }
  0xe5   :  { %675 = vmatpush.msrb.mxu3 %v1995_v3  ;;  %755 = vmatpush.msrb.mxu1 %v1874_v33 }
  0xe6   :  { %318 = vmatmul.f32.gmra.mxu2 %v1962_v45  ;;  %359 = vmatmul.f32.gmra.mxu3 %v1962_v45 }
  0xe7   :  { %648 = vmatpush.msrb.mxu2 %v1877_v35  ;;  %756 = vmatpush.msrb.mxu1 %v1877_v35 }
  0xe9   :  { %649 = vmatpush.msrb.mxu2 %v1889_v39  ;;  %757 = vmatpush.msrb.mxu1 %v1889_v39 }
  0xeb   :  { %650 = vmatpush.msrb.mxu2 %v1892_v41  ;;  %758 = vmatpush.msrb.mxu1 %v1892_v41 }
  0xed   :  { %651 = vmatpush.msrb.mxu2 %v1895_v43  ;;  %759 = vmatpush.msrb.mxu1 %v1895_v43 }
  0xee   :  { %321 = vmatmul.f32.gmra.mxu2 %v1993_v2  ;;  %362 = vmatmul.f32.gmra.mxu3 %v1993_v2 }
  0xef   :  { %652 = vmatpush.msrb.mxu2 %v1898_v46  ;;  %760 = vmatpush.msrb.mxu1 %v1898_v46 }
  0xf1   :  { %653 = vmatpush.msrb.mxu2 %v1901_v49  ;;  %761 = vmatpush.msrb.mxu1 %v1901_v49 }
  0xf3   :  { %654 = vmatpush.msrb.mxu2 %v1904_v52  ;;  %762 = vmatpush.msrb.mxu1 %v1904_v52 }
  0xf5   :  { %655 = vmatpush.msrb.mxu2 %v1907_v55  ;;  %763 = vmatpush.msrb.mxu1 %v1907_v55 }
  0xf6   :  { %324 = vmatmul.f32.gmra.mxu2 %v2019_v17  ;;  %365 = vmatmul.f32.gmra.mxu3 %v2019_v17 }
  0xfe   :  { %327 = vmatmul.f32.gmra.mxu2 %v2042_v36  ;;  %368 = vmatmul.f32.gmra.mxu3 %v2042_v36 }
 0x106   :  { %480 = vmatmul.f32.vlgmr.msra.gmra.mxu2 %v1733_v59  ;;  %v241_v59 = vld [vmem:[%s2734_s4] sm:$0x7] }
 0x107   :  { %768 = vmatpush.msra.mxu2 %v1910_v58  ;;  %v243_v45 = vperm.slane %v241_v59, 0  ;;  %v244_v55 = vperm.slane %v241_v59, 1 }
 0x109   :  { %769 = vmatpush.msra.mxu2 %v1914_v62 }
 0x10b   :  { %770 = vmatpush.msra.mxu2 %v1918_v1 }
 0x10d   :  { %771 = vmatpush.msra.mxu2 %v1922_v4 }
 0x10f   :  { %772 = vmatpush.msra.mxu2 %v1926_v7 }
 0x111   :  { %773 = vmatpush.msra.mxu2 %v1930_v10 }
 0x113   :  { %774 = vmatpush.msra.mxu2 %v1934_v13 }
 0x115   :  { %775 = vmatpush.msra.mxu2 %v1938_v19 }
 0x117   :  { %776 = vmatpush.msra.mxu2 %v1947_v24 }
 0x119   :  { %777 = vmatpush.msra.mxu2 %v1949_v29 }
 0x11b   :  { %778 = vmatpush.msra.mxu2 %v1953_v37 }
 0x11d   :  { %779 = vmatpush.msra.mxu2 %v1965_v48 }
 0x11f   :  { %780 = vmatpush.msra.mxu2 %v1972_v51 }
 0x121   :  { %781 = vmatpush.msra.mxu2 %v1978_v54 }
 0x123   :  { %782 = vmatpush.msra.mxu2 %v1986_v63  ;;  %v461_v63 = vpop.f32.mrf.mxu1 }
 0x125   :  { %783 = vmatpush.msra.mxu2 %v1995_v3 }
 0x129   :  { %v266_v0 = vpop.f32.mrf.mxu2  ;;  %v278_v2 = vpop.f32.mrf.mxu3 }
 0x12a   :  { %v2188_v8 = vadd.f32 %v278_v2, %v243_v45 }
 0x12c   :  { %2761 = vst [vmem:[#allocation19_spill] sm:$0xff] %v2188_v8 }
 0x131   :  { %v269_v9 = vpop.f32.mrf.mxu2  ;;  %v281_v11 = vpop.f32.mrf.mxu3 }
 0x132   :  { %v2190_v12 = vadd.f32 %v269_v9, %v243_v45  ;;  %v2192_v15 = vadd.f32 %v281_v11, %v243_v45  ;;  %v2204_v9 = vperm.slane %v241_v59, 2 }
 0x134   :  { %2762 = vst [vmem:[#allocation20_spill] sm:$0xff] %v2190_v12 }
 0x135   :  { %2763 = vst [vmem:[#allocation21_spill] sm:$0xff] %v2192_v15 }
 0x139   :  { %v272_v17 = vpop.f32.mrf.mxu2  ;;  %v284_v26 = vpop.f32.mrf.mxu3 }
 0x13a   :  { %v2194_v28 = vadd.f32 %v272_v17, %v243_v45  ;;  %v2196_v30 = vadd.f32 %v284_v26, %v243_v45  ;;  %v267_v26 = vadd.f32 %v266_v0, %v243_v45 }
 0x13c   :  { %2764 = vst [vmem:[#allocation22_spill] sm:$0xff] %v2194_v28 }
 0x13d   :  { %2765 = vst [vmem:[#allocation23_spill] sm:$0xff] %v2196_v30  ;;  %v441_v30 = vpop.f32.mrf.mxu0 }
 0x141   :  { %v275_v32 = vpop.f32.mrf.mxu2  ;;  %v287_v34 = vpop.f32.mrf.mxu3 }
 0x142   :  { %v2198_v36 = vadd.f32 %v275_v32, %v243_v45  ;;  %v2200_v3 = vadd.f32 %v287_v34, %v243_v45 }
 0x144   :  { %2766 = vst [vmem:[#allocation24_spill] sm:$0xff] %v2198_v36  ;;  %v484_v36 = vadd.f32 %v441_v30, %v267_v26 }
 0x145   :  { %2767 = vst [vmem:[#allocation25_spill] sm:$0xff] %v2200_v3 }
 0x146   :  { %v1441_v59 = vmul.f32 -1.442695, %v484_v36 }
 0x148   :  { %1494 = vpow2.f32 %v1441_v59 }
 0x149   :  { %v307_v2 = vpop.f32.mrf.mxu2  ;;  %v2202_v8 = vpop.f32.mrf.mxu3 }
 0x14a   :  { %v308_v61 = vadd.f32 %v307_v2, %v244_v55 }
 0x14c   :  { %v504_v52 = vadd.f32 %v461_v63, %v308_v61 }
 0x14e   :  { %v1442_v0 = vmul.f32 -1.442695, %v504_v52 }
 0x150   :  { %1496 = vpow2.f32 %v1442_v0 }
 0x151   :  { %v310_v11 = vpop.f32.mrf.mxu2  ;;  %v351_v15 = vpop.f32.mrf.mxu3 }
 0x152   :  { %v2206_v12 = vadd.f32 %v310_v11, %v244_v55  ;;  %v2209_v17 = vadd.f32 %v351_v15, %v2204_v9  ;;  %v1495_v15 = vpop.eup %1494 }
 0x153   :  { %v488_v36 = vadd.f32 1.0, %v1495_v15 }
 0x154   :  { %2768 = vst [vmem:[#allocation26_spill] sm:$0xff] %v2206_v12 }
 0x155   :  { %2769 = vst [vmem:[#allocation27_spill] sm:$0xff] %v2209_v17  ;;  %1498 = vrcp.f32 %v488_v36  ;;  %vm494_vm2 = vweird.f32 %v488_v36 }
 0x156   :  { %v1497_v63 = vpop.eup %1496 }
 0x159   :  { %v313_v28 = vpop.f32.mrf.mxu2  ;;  %v354_v32 = vpop.f32.mrf.mxu3 }
 0x15a   :  { %v2211_v34 = vadd.f32 %v313_v28, %v244_v55  ;;  %v2214_v3 = vadd.f32 %v354_v32, %v2204_v9 }
 0x15b   :  { %v1499_v52 = vpop.eup %1498 }
 0x15c   :  { %2770 = vst [vmem:[#allocation28_spill] sm:$0xff] %v2211_v34  ;;  %v490_v0 = vmul.f32 %v1499_v52, %v488_v36  ;;  %vm495_vm1 = vweird.f32 %v1499_v52  ;;  %v2241_v34 = vld [vmem:[%s2736_s6] ss:$0 sm:$0xff] }
 0x15d   :  { %2771 = vst [vmem:[#allocation29_spill] sm:$0xff] %v2214_v3  ;;  %vm496_vm3 = vmor %vm494_vm2, %vm495_vm1 }
 0x161   :  { %v316_v60 = vpop.f32.mrf.mxu2  ;;  %v357_v11 = vpop.f32.mrf.mxu3 }
 0x162   :  { %v2216_v12 = vadd.f32 %v316_v60, %v244_v55  ;;  %v2219_v45 = vadd.f32 %v357_v11, %v2204_v9  ;;  %v508_v60 = vadd.f32 1.0, %v1497_v63 }
 0x164   :  { %2772 = vst [vmem:[#allocation30_spill] sm:$0xff] %v2216_v12  ;;  %1500 = vrcp.f32 %v508_v60  ;;  %vm514_vm6 = vweird.f32 %v508_v60  ;;  %v518_v17 = vand.u32 2147483647, %v508_v60 }
 0x165   :  { %2773 = vst [vmem:[#allocation31_spill] sm:$0xff] %v2219_v45 }
 0x166   :  { %vm519_vm8 = vcmp.eq.f32.partialorder %v518_v17, 8.507059e+37 }
 0x169   :  { %v319_v28 = vpop.f32.mrf.mxu2  ;;  %v360_v30 = vpop.f32.mrf.mxu3 }
 0x16a   :  { %v2221_v26 = vadd.f32 %v319_v28, %v244_v55  ;;  %v2224_v2 = vadd.f32 %v360_v30, %v2204_v9  ;;  %v1501_v15 = vpop.eup %1500 }
 0x16b   :  { %v510_v12 = vmul.f32 %v1501_v15, %v508_v60  ;;  %vm515_vm5 = vweird.f32 %v1501_v15 }
 0x16c   :  { %2774 = vst [vmem:[#allocation32_spill] sm:$0xff] %v2221_v26  ;;  %vm516_vm7 = vmor %vm514_vm6, %vm515_vm5 }
 0x16d   :  { %2775 = vst [vmem:[#allocation33_spill] sm:$0xff] %v2224_v2  ;;  %v491_v2 = vsub.f32 1.0, %v490_v0 }
 0x16f   :  { %v492_v3 = vmul.f32 %v1499_v52, %v491_v2 }
 0x171   :  { %v322_v61 = vpop.f32.mrf.mxu2  ;;  %v363_v32 = vpop.f32.mrf.mxu3 }
 0x172   :  { %v2226_v59 = vadd.f32 %v322_v61, %v244_v55  ;;  %v2229_v11 = vadd.f32 %v363_v32, %v2204_v9  ;;  %v493_v32 = vadd.f32 %v1499_v52, %v492_v3 }
 0x174   :  { %2776 = vst [vmem:[#allocation34_spill] sm:$0xff] %v2226_v59  ;;  %v511_v59 = vsub.f32 1.0, %v510_v12  ;;  %v349_v12 = vadd.f32 %v2202_v8, %v2204_v9 }
 0x175   :  { %2777 = vst [vmem:[#allocation35_spill] sm:$0xff] %v2229_v11  ;;  %v500_v11 = vand.u32 2147483648, %v488_v36 }
 0x179   :  { %v325_v45 = vpop.f32.mrf.mxu2  ;;  %v366_v28 = vpop.f32.mrf.mxu3 }
 0x17a   :  { %v2231_v26 = vadd.f32 %v325_v45, %v244_v55  ;;  %v2234_v30 = vadd.f32 %v366_v28, %v2204_v9  ;;  %v498_v45 = vand.u32 2147483647, %v488_v36  ;;  %v512_v28 = vmul.f32 %v1501_v15, %v511_v59 }
 0x17c   :  { %2778 = vst [vmem:[#allocation36_spill] sm:$0xff] %v2231_v26  ;;  %v501_v26 = vor.u32 1.1754944e-38, %v500_v11  ;;  %vm499_vm4 = vcmp.eq.f32.partialorder %v498_v45, 8.507059e+37  ;;  %v513_v2 = vadd.f32 %v1501_v15, %v512_v28 }
 0x17d   :  { %2779 = vst [vmem:[#allocation37_spill] sm:$0xff] %v2234_v30  ;;  %v497_v30 = vsel %vm496_vm3, %v1499_v52, %v493_v32 }
 0x17e   :  { %v502_v3 = vsel %vm499_vm4, %v501_v26, %v497_v30  ;;  %v517_v59 = vsel %vm516_vm7, %v1501_v15, %v513_v2 }
 0x181   :  { %v328_v63 = vpop.f32.mrf.mxu2 }
 0x182   :  { %v2236_v61 = vadd.f32 %v328_v63, %v244_v55  ;;  %v520_v63 = vand.u32 2147483648, %v508_v60 }
 0x184   :  { %2780 = vst [vmem:[#allocation38_spill] sm:$0xff] %v2236_v61  ;;  %v521_v54 = vor.u32 1.1754944e-38, %v520_v63 }
 0x186   :  { %v522_v11 = vsel %vm519_vm8, %v521_v54, %v517_v59 }
 0x187   :  { %v528_v52 = vsub.f32 1.0, %v522_v11  ;;  %v530_v28 = vmul.f32 0.0, %v522_v11 }
 0x189   :  { %v481_v0 = vpop.f32.mrf.mxu2 }
 0x18a   :  { %v524_v55 = vadd.f32 %v2241_v34, %v481_v0 }
 0x18c   :  { %v525_v61 = vmul.f32 %v524_v55, %v502_v3 }
 0x18e   :  { %v526_v36 = vadd.f32 %v525_v61, %v349_v12 }
 0x190   :  { %1502 = vtanh.f32 %v526_v36 }
 0x196   :  { %v1503_v32 = vpop.eup %1502 }
 0x197   :  { %v529_v45 = vmul.f32 %v1503_v32, %v528_v52 }
 0x199   :  { %v2246_v0 = vadd.f32 %v530_v28, %v529_v45 }
 0x19b   :  { %548 = vmatmul.f32.vlgmr.msra.gmra.mxu3 %v2246_v0  ;;  %568 = vmatmul.f32.vlgmr.msra.gmra.mxu0 %v2246_v0 }
 0x19c   :  { %588 = vmatmul.f32.vlgmr.msra.gmra.mxu1 %v2246_v0  ;;  %788 = vmatpush.msra.mxu3 %v1970_v50 }
 0x19d   :  { %856 = vmatpush.msra.mxu0 %v1836_v14  ;;  %876 = vmatpush.msra.mxu1 %v1910_v58  ;;  %v2781_v14 = vld [vmem:[#allocation14_spill] sm:$0xff] }
 0x19e   :  { %789 = vmatpush.msra.mxu3 %v1975_v53 }
 0x19f   :  { %857 = vmatpush.msra.mxu0 %v1840_v16  ;;  %877 = vmatpush.msra.mxu1 %v1914_v62  ;;  %v2782_v16 = vld [vmem:[#allocation17_spill] sm:$0xff] }
 0x1a0   :  { %790 = vmatpush.msra.mxu3 %v2002_v5 }
 0x1a1   :  { %858 = vmatpush.msra.mxu0 %v1843_v18  ;;  %878 = vmatpush.msra.mxu1 %v1918_v1  ;;  %v2783_v18 = vld [vmem:[#allocation12_spill] sm:$0xff] }
 0x1a2   :  { %791 = vmatpush.msra.mxu3 %v2004_v6 }
 0x1a3   :  { %859 = vmatpush.msra.mxu0 %v1853_v23  ;;  %879 = vmatpush.msra.mxu1 %v1922_v4  ;;  %v2784_v23 = vld [vmem:[#allocation15_spill] sm:$0xff] }
 0x1a4   :  { %792 = vmatpush.msra.mxu3 %v2027_v21 }
 0x1a5   :  { %860 = vmatpush.msra.mxu0 %v1857_v25  ;;  %880 = vmatpush.msra.mxu1 %v1926_v7  ;;  %v2785_v25 = vld [vmem:[#allocation18_spill] sm:$0xff] }
 0x1a6   :  { %793 = vmatpush.msra.mxu3 %v2029_v22 }
 0x1a7   :  { %861 = vmatpush.msra.mxu0 %v1860_v27  ;;  %881 = vmatpush.msra.mxu1 %v1930_v10  ;;  %v2786_v27 = vld [vmem:[#allocation13_spill] sm:$0xff] }
 0x1a8   :  { %794 = vmatpush.msra.mxu3 %v2048_v38 }
 0x1a9   :  { %862 = vmatpush.msra.mxu0 %v1870_v31  ;;  %882 = vmatpush.msra.mxu1 %v1934_v13  ;;  %v2787_v31 = vld [vmem:[#allocation16_spill] sm:$0xff] }
 0x1aa   :  { %795 = vmatpush.msra.mxu3 %v2050_v20 }
 0x1ab   :  { %863 = vmatpush.msra.mxu0 %v1874_v33  ;;  %883 = vmatpush.msra.mxu1 %v1938_v19  ;;  %v2299_v33 = vpop.f32.mrf.mxu3 }
 0x1ac   :  { %796 = vmatpush.msra.mxu3 %v2065_v40 }
 0x1ad   :  { %864 = vmatpush.msra.mxu0 %v1877_v35  ;;  %884 = vmatpush.msra.mxu1 %v1947_v24 }
 0x1ae   :  { %797 = vmatpush.msra.mxu3 %v2067_v42 }
 0x1af   :  { %865 = vmatpush.msra.mxu0 %v1889_v39  ;;  %885 = vmatpush.msra.mxu1 %v1949_v29  ;;  %v2788_v39 = vld [vmem:[#allocation26_spill] sm:$0xff] }
 0x1b0   :  { %798 = vmatpush.msra.mxu3 %v2082_v44 }
 0x1b1   :  { %866 = vmatpush.msra.mxu0 %v1892_v41  ;;  %886 = vmatpush.msra.mxu1 %v1953_v37 }
 0x1b2   :  { %799 = vmatpush.msra.mxu3 %v2084_v47 }
 0x1b3   :  { %867 = vmatpush.msra.mxu0 %v1895_v43  ;;  %887 = vmatpush.msra.mxu1 %v1965_v48 }
 0x1b4   :  { %800 = vmatpush.msra.mxu3 %v2097_v56 }
 0x1b5   :  { %868 = vmatpush.msra.mxu0 %v1898_v46  ;;  %888 = vmatpush.msra.mxu1 %v1972_v51 }
 0x1b6   :  { %801 = vmatpush.msra.mxu3 %v2099_v57 }
 0x1b7   :  { %869 = vmatpush.msra.mxu0 %v1901_v49  ;;  %889 = vmatpush.msra.mxu1 %v2781_v14  ;;  %v2789_v49 = vld [vmem:[#allocation20_spill] sm:$0xff] }
 0x1b8   :  { %802 = vmatpush.msra.mxu3 %v2782_v16 }
 0x1b9   :  { %870 = vmatpush.msra.mxu0 %v2783_v18  ;;  %890 = vmatpush.msra.mxu1 %v2784_v23 }
 0x1ba   :  { %803 = vmatpush.msra.mxu3 %v2785_v25 }
 0x1bb   :  { %871 = vmatpush.msra.mxu0 %v2786_v27  ;;  %891 = vmatpush.msra.mxu1 %v2787_v31 }
 0x218   :  { %v569_v35 = vpop.f32.mrf.mxu0 }
 0x219   :  { %v612_v41 = vadd.f32 %v569_v35, %v2788_v39  ;;  %v589_v52 = vpop.f32.mrf.mxu1 }
 0x21a   :  { %v632_v28 = vadd.f32 %v2241_v34, %v589_v52 }
 0x21b   :  { %v1444_v43 = vmul.f32 -1.442695, %v612_v41 }
 0x21d   :  { %1504 = vpow2.f32 %v1444_v43 }
 0x21e   :  { %v549_v46 = vpop.f32.mrf.mxu3 }
 0x21f   :  { %v592_v54 = vadd.f32 %v549_v46, %v2789_v49  ;;  %v2790_v46 = vld [vmem:[#allocation27_spill] sm:$0xff] }
 0x221   :  { %v1443_v8 = vmul.f32 -1.442695, %v592_v54 }
 0x223   :  { %v1505_v17 = vpop.eup %1504  ;;  %1506 = vpow2.f32 %v1443_v8 }
 0x224   :  { %v616_v26 = vadd.f32 1.0, %v1505_v17 }
 0x226   :  { %1508 = vrcp.f32 %v616_v26  ;;  %v628_v39 = vand.u32 2147483648, %v616_v26  ;;  %vm622_vm14 = vweird.f32 %v616_v26  ;;  %v626_v43 = vand.u32 2147483647, %v616_v26 }
 0x228   :  { %v629_v8 = vor.u32 1.1754944e-38, %v628_v39  ;;  %vm627_vm0 = vcmp.eq.f32.partialorder %v626_v43, 8.507059e+37 }
 0x229   :  { %v1507_v60 = vpop.eup %1506 }
 0x22a   :  { %v596_v30 = vadd.f32 1.0, %v1507_v60 }
 0x22c   :  { %1510 = vrcp.f32 %v596_v30  ;;  %v1509_v15 = vpop.eup %1508  ;;  %v608_v63 = vand.u32 2147483648, %v596_v30  ;;  %v606_v59 = vand.u32 2147483647, %v596_v30  ;;  %vm602_vm10 = vweird.f32 %v596_v30 }
 0x22d   :  { %v618_v61 = vmul.f32 %v1509_v15, %v616_v26  ;;  %vm623_vm13 = vweird.f32 %v1509_v15  ;;  %v2312_v26 = vld [vmem:[#allocation4 + $0x168] sm:$0xff] }
 0x22e   :  { %v609_v45 = vor.u32 1.1754944e-38, %v608_v63  ;;  %vm607_vm12 = vcmp.eq.f32.partialorder %v606_v59, 8.507059e+37  ;;  %vm624_vm15 = vmor %vm622_vm14, %vm623_vm13  ;;  %v2792_v63 = vld [vmem:[#allocation28_spill] sm:$0xff] }
 0x22f   :  { %v619_v3 = vsub.f32 1.0, %v618_v61 }
 0x231   :  { %v620_v11 = vmul.f32 %v1509_v15, %v619_v3  ;;  %v2322_v3 = vld [vmem:[#allocation4 + $0x138] sm:$0xff] }
 0x232   :  { %v1511_v55 = vpop.eup %1510 }
 0x233   :  { %v598_v2 = vmul.f32 %v1511_v55, %v596_v30  ;;  %vm603_vm9 = vweird.f32 %v1511_v55  ;;  %v621_v27 = vadd.f32 %v1509_v15, %v620_v11 }
 0x234   :  { %vm604_vm11 = vmor %vm602_vm10, %vm603_vm9 }
 0x235   :  { %v599_v12 = vsub.f32 1.0, %v598_v2  ;;  %v625_v54 = vsel %vm624_vm15, %v1509_v15, %v621_v27  ;;  %v2317_v15 = vld [vmem:[#allocation4 + $0x150] sm:$0xff] }
 0x236   :  { %v630_v17 = vsel %vm627_vm0, %v629_v8, %v625_v54 }
 0x237   :  { %v600_v36 = vmul.f32 %v1511_v55, %v599_v12  ;;  %v636_v60 = vsub.f32 1.0, %v630_v17  ;;  %v2791_v12 = vld [vmem:[#allocation22_spill] sm:$0xff] }
 0x239   :  { %v601_v32 = vadd.f32 %v1511_v55, %v600_v36 }
 0x23b   :  { %v605_v18 = vsel %vm604_vm11, %v1511_v55, %v601_v32  ;;  %v638_v55 = vmul.f32 %v630_v17, %v2246_v0 }
 0x23c   :  { %v610_v35 = vsel %vm607_vm12, %v609_v45, %v605_v18 }
 0x23d   :  { %v633_v41 = vmul.f32 %v632_v28, %v610_v35 }
 0x23f   :  { %v634_v49 = vadd.f32 %v633_v41, %v2790_v46 }
 0x241   :  { %1512 = vtanh.f32 %v634_v49 }
 0x247   :  { %v1513_v30 = vpop.eup %1512 }
 0x248   :  { %v637_v61 = vmul.f32 %v1513_v30, %v636_v60 }
 0x24a   :  { %v2306_v2 = vadd.f32 %v638_v55, %v637_v61 }
 0x24c   :  { %656 = vmatmul.f32.vlgmr.msrb.gmra.mxu2 %v2306_v2  ;;  %676 = vmatmul.f32.vlgmr.msrb.gmra.mxu3 %v2306_v2 }
 0x24d   :  { %696 = vmatmul.f32.vlgmr.msrb.gmra.mxu0 %v2306_v2  ;;  %896 = vmatpush.msrb.mxu2 %v1970_v50  ;;  %v2327_v50 = vld [vmem:[#allocation4 + $0x120] sm:$0xff] }
 0x24e   :  { %964 = vmatpush.msrb.mxu3 %v2312_v26  ;;  %984 = vmatpush.msrb.mxu0 %v1910_v58  ;;  %v2332_v58 = vld [vmem:[#allocation4 + $0x108] sm:$0xff] }
 0x24f   :  { %897 = vmatpush.msrb.mxu2 %v1975_v53 }
 0x250   :  { %965 = vmatpush.msrb.mxu3 %v2317_v15  ;;  %985 = vmatpush.msrb.mxu0 %v1914_v62  ;;  %v2337_v62 = vld [vmem:[#allocation4 + $0xf0] sm:$0xff] }
 0x251   :  { %898 = vmatpush.msrb.mxu2 %v2002_v5 }
 0x252   :  { %966 = vmatpush.msrb.mxu3 %v2322_v3  ;;  %986 = vmatpush.msrb.mxu0 %v1918_v1  ;;  %v2342_v1 = vld [vmem:[#allocation4 + $0xd8] sm:$0xff] }
 0x253   :  { %899 = vmatpush.msrb.mxu2 %v2004_v6 }
 0x254   :  { %967 = vmatpush.msrb.mxu3 %v2327_v50  ;;  %987 = vmatpush.msrb.mxu0 %v1922_v4  ;;  %v2347_v4 = vld [vmem:[#allocation4 + $0xc0] sm:$0xff] }
 0x255   :  { %900 = vmatpush.msrb.mxu2 %v2027_v21 }
 0x256   :  { %968 = vmatpush.msrb.mxu3 %v2332_v58  ;;  %988 = vmatpush.msrb.mxu0 %v1926_v7  ;;  %v2352_v7 = vld [vmem:[#allocation4 + $0xa8] sm:$0xff] }
 0x257   :  { %901 = vmatpush.msrb.mxu2 %v2029_v22 }
 0x258   :  { %969 = vmatpush.msrb.mxu3 %v2337_v62  ;;  %989 = vmatpush.msrb.mxu0 %v1930_v10  ;;  %v2357_v10 = vld [vmem:[#allocation4 + $0x90] sm:$0xff] }
 0x259   :  { %902 = vmatpush.msrb.mxu2 %v2048_v38 }
 0x25a   :  { %970 = vmatpush.msrb.mxu3 %v2342_v1  ;;  %990 = vmatpush.msrb.mxu0 %v1934_v13  ;;  %v2362_v13 = vld [vmem:[#allocation4 + $0x78] sm:$0xff] }
 0x25b   :  { %903 = vmatpush.msrb.mxu2 %v2050_v20 }
 0x25c   :  { %971 = vmatpush.msrb.mxu3 %v2347_v4  ;;  %991 = vmatpush.msrb.mxu0 %v1938_v19  ;;  %v2367_v19 = vld [vmem:[#allocation4 + $0x60] sm:$0xff] }
 0x25d   :  { %904 = vmatpush.msrb.mxu2 %v2065_v40 }
 0x25e   :  { %972 = vmatpush.msrb.mxu3 %v2352_v7  ;;  %992 = vmatpush.msrb.mxu0 %v1947_v24  ;;  %v2372_v24 = vld [vmem:[#allocation4 + $0x48] sm:$0xff] }
 0x25f   :  { %905 = vmatpush.msrb.mxu2 %v2067_v42 }
 0x260   :  { %973 = vmatpush.msrb.mxu3 %v2357_v10  ;;  %993 = vmatpush.msrb.mxu0 %v1949_v29  ;;  %v2377_v29 = vld [vmem:[#allocation4 + $0x30] sm:$0xff] }
 0x261   :  { %906 = vmatpush.msrb.mxu2 %v2082_v44 }
 0x262   :  { %974 = vmatpush.msrb.mxu3 %v2362_v13  ;;  %994 = vmatpush.msrb.mxu0 %v1953_v37  ;;  %v2382_v37 = vld [vmem:[#allocation4 + $0x18] sm:$0xff] }
 0x263   :  { %907 = vmatpush.msrb.mxu2 %v2084_v47 }
 0x264   :  { %975 = vmatpush.msrb.mxu3 %v2367_v19  ;;  %995 = vmatpush.msrb.mxu0 %v1965_v48  ;;  %v2387_v48 = vld [vmem:[#allocation4] sm:$0xff] }
 0x265   :  { %908 = vmatpush.msrb.mxu2 %v2097_v56 }
 0x266   :  { %976 = vmatpush.msrb.mxu3 %v2372_v24  ;;  %996 = vmatpush.msrb.mxu0 %v1972_v51 }
 0x267   :  { %909 = vmatpush.msrb.mxu2 %v2099_v57 }
 0x268   :  { %977 = vmatpush.msrb.mxu3 %v2377_v29  ;;  %997 = vmatpush.msrb.mxu0 %v2781_v14 }
 0x269   :  { %910 = vmatpush.msrb.mxu2 %v2782_v16 }
 0x26a   :  { %978 = vmatpush.msrb.mxu3 %v2382_v37  ;;  %998 = vmatpush.msrb.mxu0 %v2784_v23 }
 0x26b   :  { %911 = vmatpush.msrb.mxu2 %v2785_v25 }
 0x26c   :  { %979 = vmatpush.msrb.mxu3 %v2387_v48  ;;  %999 = vmatpush.msrb.mxu0 %v2787_v31 }
 0x2ca   :  { %v697_v49 = vpop.f32.mrf.mxu0 }
 0x2cb   :  { %v740_v60 = vadd.f32 %v2241_v34, %v697_v49 }
 0x2cf   :  { %v657_v51 = vpop.f32.mrf.mxu2  ;;  %v677_v53 = vpop.f32.mrf.mxu3 }
 0x2d0   :  { %v700_v14 = vadd.f32 %v657_v51, %v2791_v12  ;;  %v720_v36 = vadd.f32 %v677_v53, %v2792_v63 }
 0x2d2   :  { %v1445_v59 = vmul.f32 -1.442695, %v700_v14  ;;  %v1446_v11 = vmul.f32 -1.442695, %v720_v36  ;;  %v2793_v14 = vld [vmem:[#allocation29_spill] sm:$0xff] }
 0x2d4   :  { %1514 = vpow2.f32 %v1445_v59 }
 0x2d5   :  { %1516 = vpow2.f32 %v1446_v11 }
 0x2da   :  { %v1515_v52 = vpop.eup %1514 }
 0x2db   :  { %v1517_v23 = vpop.eup %1516  ;;  %v704_v32 = vadd.f32 1.0, %v1515_v52 }
 0x2dc   :  { %v724_v45 = vadd.f32 1.0, %v1517_v23 }
 0x2dd   :  { %1518 = vrcp.f32 %v704_v32  ;;  %v716_v39 = vand.u32 2147483648, %v704_v32  ;;  %v714_v46 = vand.u32 2147483647, %v704_v32  ;;  %vm710_vm2 = vweird.f32 %v704_v32 }
 0x2de   :  { %1520 = vrcp.f32 %v724_v45  ;;  %v736_v53 = vand.u32 2147483648, %v724_v45  ;;  %vm730_vm6 = vweird.f32 %v724_v45  ;;  %v734_v12 = vand.u32 2147483647, %v724_v45 }
 0x2df   :  { %v717_v17 = vor.u32 1.1754944e-38, %v716_v39  ;;  %vm715_vm4 = vcmp.eq.f32.partialorder %v714_v46, 8.507059e+37  ;;  %v2417_v39 = vld [vmem:[#allocation4 + $0x140] sm:$0xff] }
 0x2e0   :  { %v737_v59 = vor.u32 1.1754944e-38, %v736_v53  ;;  %vm735_vm8 = vcmp.eq.f32.partialorder %v734_v12, 8.507059e+37  ;;  %v2794_v46 = vld [vmem:[#allocation24_spill] sm:$0xff] }
 0x2e3   :  { %v1519_v28 = vpop.eup %1518 }
 0x2e4   :  { %v1521_v18 = vpop.eup %1520  ;;  %v706_v27 = vmul.f32 %v1519_v28, %v704_v32  ;;  %vm711_vm1 = vweird.f32 %v1519_v28 }
 0x2e5   :  { %v726_v31 = vmul.f32 %v1521_v18, %v724_v45  ;;  %vm712_vm3 = vmor %vm710_vm2, %vm711_vm1  ;;  %vm731_vm5 = vweird.f32 %v1521_v18  ;;  %v2401_v45 = vld [vmem:[#allocation4 + $0x178] sm:$0xff] }
 0x2e6   :  { %v707_v35 = vsub.f32 1.0, %v706_v27  ;;  %vm732_vm7 = vmor %vm730_vm6, %vm731_vm5 }
 0x2e7   :  { %v727_v41 = vsub.f32 1.0, %v726_v31  ;;  %v2408_v31 = vld [vmem:[#allocation4 + $0x160] sm:$0xff] }
 0x2e8   :  { %v708_v43 = vmul.f32 %v1519_v28, %v707_v35  ;;  %v2412_v35 = vld [vmem:[#allocation4 + $0x158] sm:$0xff] }
 0x2e9   :  { %v728_v54 = vmul.f32 %v1521_v18, %v727_v41  ;;  %v2422_v41 = vld [vmem:[#allocation4 + $0x128] sm:$0xff] }
 0x2ea   :  { %v709_v8 = vadd.f32 %v1519_v28, %v708_v43  ;;  %v2427_v43 = vld [vmem:[#allocation4 + $0x110] sm:$0xff] }
 0x2eb   :  { %v729_v55 = vadd.f32 %v1521_v18, %v728_v54 }
 0x2ec   :  { %v713_v30 = vsel %vm712_vm3, %v1519_v28, %v709_v8  ;;  %v2795_v8 = vld [vmem:[#allocation30_spill] sm:$0xff] }
 0x2ed   :  { %v718_v61 = vsel %vm715_vm4, %v717_v17, %v713_v30  ;;  %v733_v36 = vsel %vm732_vm7, %v1521_v18, %v729_v55  ;;  %v2405_v18 = vld [vmem:[#allocation4 + $0x170] sm:$0xff] }
 0x2ee   :  { %v741_v51 = vmul.f32 %v740_v60, %v718_v61  ;;  %v738_v11 = vsel %vm735_vm8, %v737_v59, %v733_v36 }
 0x2ef   :  { %v744_v52 = vsub.f32 1.0, %v738_v11  ;;  %v746_v28 = vmul.f32 %v738_v11, %v2306_v2 }
 0x2f0   :  { %v742_v63 = vadd.f32 %v741_v51, %v2793_v14 }
 0x2f2   :  { %1522 = vtanh.f32 %v742_v63 }
 0x2f8   :  { %v1523_v23 = vpop.eup %1522 }
 0x2f9   :  { %v745_v32 = vmul.f32 %v1523_v23, %v744_v52 }
 0x2fb   :  { %v2396_v27 = vadd.f32 %v746_v28, %v745_v32 }
 0x2fd   :  { %764 = vmatmul.f32.vlgmr.msrb.gmra.mxu1 %v2396_v27  ;;  %784 = vmatmul.f32.vlgmr.msra.gmra.mxu2 %v2396_v27 }
 0x2fe   :  { %804 = vmatmul.f32.vlgmr.msra.gmra.mxu3 %v2396_v27  ;;  %1004 = vmatpush.msrb.mxu1 %v2401_v45 }
 0x2ff   :  { %1072 = vmatpush.msra.mxu2 %v2312_v26  ;;  %1092 = vmatpush.msra.mxu3 %v2405_v18 }
 0x300   :  { %1005 = vmatpush.msrb.mxu1 %v2408_v31 }
 0x301   :  { %1073 = vmatpush.msra.mxu2 %v2317_v15  ;;  %1093 = vmatpush.msra.mxu3 %v2412_v35 }
 0x302   :  { %1006 = vmatpush.msrb.mxu1 %v2002_v5  ;;  %v2432_v5 = vld [vmem:[#allocation4 + $0xf8] sm:$0xff] }
 0x303   :  { %1074 = vmatpush.msra.mxu2 %v2322_v3  ;;  %1094 = vmatpush.msra.mxu3 %v2417_v39 }
 0x304   :  { %1007 = vmatpush.msrb.mxu1 %v2004_v6  ;;  %v2437_v6 = vld [vmem:[#allocation4 + $0xe0] sm:$0xff] }
 0x305   :  { %1075 = vmatpush.msra.mxu2 %v2327_v50  ;;  %1095 = vmatpush.msra.mxu3 %v2422_v41 }
 0x306   :  { %1008 = vmatpush.msrb.mxu1 %v2027_v21  ;;  %v2442_v21 = vld [vmem:[#allocation4 + $0xc8] sm:$0xff] }
 0x307   :  { %1076 = vmatpush.msra.mxu2 %v2332_v58  ;;  %1096 = vmatpush.msra.mxu3 %v2427_v43 }
 0x308   :  { %1009 = vmatpush.msrb.mxu1 %v2029_v22  ;;  %v2447_v22 = vld [vmem:[#allocation4 + $0xb0] sm:$0xff] }
 0x309   :  { %1077 = vmatpush.msra.mxu2 %v2337_v62  ;;  %1097 = vmatpush.msra.mxu3 %v2432_v5 }
 0x30a   :  { %1010 = vmatpush.msrb.mxu1 %v2048_v38  ;;  %v2452_v38 = vld [vmem:[#allocation4 + $0x98] sm:$0xff] }
 0x30b   :  { %1078 = vmatpush.msra.mxu2 %v2342_v1  ;;  %1098 = vmatpush.msra.mxu3 %v2437_v6 }
 0x30c   :  { %1011 = vmatpush.msrb.mxu1 %v2050_v20  ;;  %v2457_v20 = vld [vmem:[#allocation4 + $0x80] sm:$0xff] }
 0x30d   :  { %1079 = vmatpush.msra.mxu2 %v2347_v4  ;;  %1099 = vmatpush.msra.mxu3 %v2442_v21 }
 0x30e   :  { %1012 = vmatpush.msrb.mxu1 %v2065_v40  ;;  %v2462_v40 = vld [vmem:[#allocation4 + $0x68] sm:$0xff] }
 0x30f   :  { %1080 = vmatpush.msra.mxu2 %v2352_v7  ;;  %1100 = vmatpush.msra.mxu3 %v2447_v22 }
 0x310   :  { %1013 = vmatpush.msrb.mxu1 %v2067_v42  ;;  %v2467_v42 = vld [vmem:[#allocation4 + $0x50] sm:$0xff] }
 0x311   :  { %1081 = vmatpush.msra.mxu2 %v2357_v10  ;;  %1101 = vmatpush.msra.mxu3 %v2452_v38 }
 0x312   :  { %1014 = vmatpush.msrb.mxu1 %v2082_v44  ;;  %v2472_v44 = vld [vmem:[#allocation4 + $0x38] sm:$0xff] }
 0x313   :  { %1082 = vmatpush.msra.mxu2 %v2362_v13  ;;  %1102 = vmatpush.msra.mxu3 %v2457_v20 }
 0x314   :  { %1015 = vmatpush.msrb.mxu1 %v2084_v47  ;;  %v2477_v47 = vld [vmem:[#allocation4 + $0x20] sm:$0xff] }
 0x315   :  { %1083 = vmatpush.msra.mxu2 %v2367_v19  ;;  %1103 = vmatpush.msra.mxu3 %v2462_v40 }
 0x316   :  { %1016 = vmatpush.msrb.mxu1 %v2097_v56  ;;  %v2482_v56 = vld [vmem:[#allocation4 + $0x8] sm:$0xff] }
 0x317   :  { %1084 = vmatpush.msra.mxu2 %v2372_v24  ;;  %1104 = vmatpush.msra.mxu3 %v2467_v42 }
 0x318   :  { %1017 = vmatpush.msrb.mxu1 %v2099_v57 }
 0x319   :  { %1085 = vmatpush.msra.mxu2 %v2377_v29  ;;  %1105 = vmatpush.msra.mxu3 %v2472_v44 }
 0x31a   :  { %1018 = vmatpush.msrb.mxu1 %v2782_v16 }
 0x31b   :  { %1086 = vmatpush.msra.mxu2 %v2382_v37  ;;  %1106 = vmatpush.msra.mxu3 %v2477_v47 }
 0x31c   :  { %1019 = vmatpush.msrb.mxu1 %v2785_v25 }
 0x31d   :  { %1087 = vmatpush.msra.mxu2 %v2387_v48  ;;  %1107 = vmatpush.msra.mxu3 %v2482_v56 }
 0x37a   :  { %v765_v57 = vpop.f32.mrf.mxu1 }
 0x37b   :  { %v808_v49 = vadd.f32 %v765_v57, %v2794_v46 }
 0x37d   :  { %v1447_v54 = vmul.f32 -1.442695, %v808_v49 }
 0x37f   :  { %1524 = vpow2.f32 %v1447_v54 }
 0x380   :  { %v785_v16 = vpop.f32.mrf.mxu2 }
 0x381   :  { %v828_v17 = vadd.f32 %v785_v16, %v2795_v8  ;;  %v805_v11 = vpop.f32.mrf.mxu3 }
 0x382   :  { %v848_v46 = vadd.f32 %v2241_v34, %v805_v11 }
 0x383   :  { %v1448_v60 = vmul.f32 -1.442695, %v828_v17 }
 0x385   :  { %v1525_v30 = vpop.eup %1524  ;;  %1526 = vpow2.f32 %v1448_v60 }
 0x386   :  { %v812_v61 = vadd.f32 1.0, %v1525_v30  ;;  %v2796_v30 = vld [vmem:[#allocation31_spill] sm:$0xff] }
 0x388   :  { %1528 = vrcp.f32 %v812_v61  ;;  %v824_v14 = vand.u32 2147483648, %v812_v61  ;;  %v822_v36 = vand.u32 2147483647, %v812_v61  ;;  %vm818_vm10 = vweird.f32 %v812_v61 }
 0x38a   :  { %v825_v32 = vor.u32 1.1754944e-38, %v824_v14  ;;  %vm823_vm12 = vcmp.eq.f32.partialorder %v822_v36, 8.507059e+37 }
 0x38b   :  { %v1527_v25 = vpop.eup %1526 }
 0x38c   :  { %v832_v55 = vadd.f32 1.0, %v1527_v25 }
 0x38e   :  { %v1529_v51 = vpop.eup %1528  ;;  %1530 = vrcp.f32 %v832_v55  ;;  %v844_v16 = vand.u32 2147483648, %v832_v55  ;;  %v842_v17 = vand.u32 2147483647, %v832_v55  ;;  %vm838_vm14 = vweird.f32 %v832_v55 }
 0x38f   :  { %v814_v53 = vmul.f32 %v1529_v51, %v812_v61  ;;  %vm819_vm9 = vweird.f32 %v1529_v51 }
 0x390   :  { %vm820_vm11 = vmor %vm818_vm10, %vm819_vm9  ;;  %vm843_vm0 = vcmp.eq.f32.partialorder %v842_v17, 8.507059e+37 }
 0x391   :  { %v815_v12 = vsub.f32 1.0, %v814_v53  ;;  %v845_v53 = vor.u32 1.1754944e-38, %v844_v16 }
 0x393   :  { %v816_v63 = vmul.f32 %v1529_v51, %v815_v12 }
 0x394   :  { %v1531_v59 = vpop.eup %1530 }
 0x395   :  { %v834_v52 = vmul.f32 %v1531_v59, %v832_v55  ;;  %v817_v23 = vadd.f32 %v1529_v51, %v816_v63  ;;  %vm839_vm13 = vweird.f32 %v1531_v59  ;;  %v2501_v55 = vld [vmem:[#allocation4 + $0x148] sm:$0xff] }
 0x396   :  { %vm840_vm15 = vmor %vm838_vm14, %vm839_vm13 }
 0x397   :  { %v835_v28 = vsub.f32 1.0, %v834_v52  ;;  %v821_v57 = vsel %vm820_vm11, %v1529_v51, %v817_v23 }
 0x398   :  { %v826_v49 = vsel %vm823_vm12, %v825_v32, %v821_v57 }
 0x399   :  { %v836_v54 = vmul.f32 %v1531_v59, %v835_v28  ;;  %v849_v8 = vmul.f32 %v848_v46, %v826_v49 }
 0x39b   :  { %v837_v60 = vadd.f32 %v1531_v59, %v836_v54  ;;  %v850_v25 = vadd.f32 %v849_v8, %v2796_v30  ;;  %v2799_v30 = vld [vmem:[#allocation33_spill] sm:$0xff] }
 0x39d   :  { %v841_v61 = vsel %vm840_vm15, %v1531_v59, %v837_v60  ;;  %1532 = vtanh.f32 %v850_v25  ;;  %v2506_v59 = vld [vmem:[#allocation4 + $0x130] sm:$0xff] }
 0x39e   :  { %v846_v12 = vsel %vm843_vm0, %v845_v53, %v841_v61 }
 0x39f   :  { %v852_v51 = vsub.f32 1.0, %v846_v12  ;;  %v854_v36 = vmul.f32 %v846_v12, %v2396_v27 }
 0x3a3   :  { %v1533_v14 = vpop.eup %1532 }
 0x3a4   :  { %v853_v63 = vmul.f32 %v1533_v14, %v852_v51 }
 0x3a6   :  { %v2490_v11 = vadd.f32 %v854_v36, %v853_v63 }
 0x3a8   :  { %872 = vmatmul.f32.vlgmr.msra.gmra.mxu0 %v2490_v11  ;;  %892 = vmatmul.f32.vlgmr.msra.gmra.mxu1 %v2490_v11 }
 0x3a9   :  { %912 = vmatmul.f32.vlgmr.msrb.gmra.mxu2 %v2490_v11  ;;  %1112 = vmatpush.msra.mxu0 %v2401_v45 }
 0x3aa   :  { %1180 = vmatpush.msra.mxu1 %v2312_v26  ;;  %1200 = vmatpush.msrb.mxu2 %v2405_v18  ;;  %v2511_v26 = vld [vmem:[#allocation4 + $0x118] sm:$0xff] }
 0x3ab   :  { %1113 = vmatpush.msra.mxu0 %v2408_v31  ;;  %v2797_v18 = vld [vmem:[#allocation19_spill] sm:$0xff] }
 0x3ac   :  { %1181 = vmatpush.msra.mxu1 %v2317_v15  ;;  %1201 = vmatpush.msrb.mxu2 %v2412_v35  ;;  %v2516_v15 = vld [vmem:[#allocation4 + $0x100] sm:$0xff] }
 0x3ad   :  { %1114 = vmatpush.msra.mxu0 %v2501_v55 }
 0x3ae   :  { %1182 = vmatpush.msra.mxu1 %v2322_v3  ;;  %1202 = vmatpush.msrb.mxu2 %v2417_v39  ;;  %v2521_v3 = vld [vmem:[#allocation4 + $0xe8] sm:$0xff] }
 0x3af   :  { %1115 = vmatpush.msra.mxu0 %v2506_v59  ;;  %v2798_v39 = vld [vmem:[#allocation32_spill] sm:$0xff] }
 0x3b0   :  { %1183 = vmatpush.msra.mxu1 %v2327_v50  ;;  %1203 = vmatpush.msrb.mxu2 %v2422_v41  ;;  %v2526_v50 = vld [vmem:[#allocation4 + $0xd0] sm:$0xff] }
 0x3b1   :  { %1116 = vmatpush.msra.mxu0 %v2511_v26 }
 0x3b2   :  { %1184 = vmatpush.msra.mxu1 %v2332_v58  ;;  %1204 = vmatpush.msrb.mxu2 %v2427_v43  ;;  %v2531_v58 = vld [vmem:[#allocation4 + $0xb8] sm:$0xff] }
 0x3b3   :  { %1117 = vmatpush.msra.mxu0 %v2516_v15 }
 0x3b4   :  { %1185 = vmatpush.msra.mxu1 %v2337_v62  ;;  %1205 = vmatpush.msrb.mxu2 %v2432_v5  ;;  %v2536_v62 = vld [vmem:[#allocation4 + $0xa0] sm:$0xff] }
 0x3b5   :  { %1118 = vmatpush.msra.mxu0 %v2521_v3 }
 0x3b6   :  { %1186 = vmatpush.msra.mxu1 %v2342_v1  ;;  %1206 = vmatpush.msrb.mxu2 %v2437_v6  ;;  %v2541_v1 = vld [vmem:[#allocation4 + $0x88] sm:$0xff] }
 0x3b7   :  { %1119 = vmatpush.msra.mxu0 %v2526_v50 }
 0x3b8   :  { %1187 = vmatpush.msra.mxu1 %v2347_v4  ;;  %1207 = vmatpush.msrb.mxu2 %v2442_v21  ;;  %v2546_v4 = vld [vmem:[#allocation4 + $0x70] sm:$0xff] }
 0x3b9   :  { %1120 = vmatpush.msra.mxu0 %v2531_v58 }
 0x3ba   :  { %1188 = vmatpush.msra.mxu1 %v2352_v7  ;;  %1208 = vmatpush.msrb.mxu2 %v2447_v22  ;;  %v2551_v7 = vld [vmem:[#allocation4 + $0x58] sm:$0xff] }
 0x3bb   :  { %1121 = vmatpush.msra.mxu0 %v2536_v62 }
 0x3bc   :  { %1189 = vmatpush.msra.mxu1 %v2357_v10  ;;  %1209 = vmatpush.msrb.mxu2 %v2452_v38  ;;  %v2556_v10 = vld [vmem:[#allocation4 + $0x40] sm:$0xff] }
 0x3bd   :  { %1122 = vmatpush.msra.mxu0 %v2541_v1 }
 0x3be   :  { %1190 = vmatpush.msra.mxu1 %v2362_v13  ;;  %1210 = vmatpush.msrb.mxu2 %v2457_v20  ;;  %v2561_v13 = vld [vmem:[#allocation4 + $0x28] sm:$0xff] }
 0x3bf   :  { %1123 = vmatpush.msra.mxu0 %v2546_v4 }
 0x3c0   :  { %1191 = vmatpush.msra.mxu1 %v2367_v19  ;;  %1211 = vmatpush.msrb.mxu2 %v2462_v40  ;;  %v2566_v19 = vld [vmem:[#allocation4 + $0x10] sm:$0xff] }
 0x3c1   :  { %1124 = vmatpush.msra.mxu0 %v2551_v7 }
 0x3c2   :  { %1192 = vmatpush.msra.mxu1 %v2372_v24  ;;  %1212 = vmatpush.msrb.mxu2 %v2467_v42 }
 0x3c3   :  { %1125 = vmatpush.msra.mxu0 %v2556_v10 }
 0x3c4   :  { %1193 = vmatpush.msra.mxu1 %v2377_v29  ;;  %1213 = vmatpush.msrb.mxu2 %v2472_v44 }
 0x3c5   :  { %1126 = vmatpush.msra.mxu0 %v2561_v13 }
 0x3c6   :  { %1194 = vmatpush.msra.mxu1 %v2382_v37  ;;  %1214 = vmatpush.msrb.mxu2 %v2477_v47 }
 0x3c7   :  { %1127 = vmatpush.msra.mxu0 %v2566_v19 }
 0x3c8   :  { %1195 = vmatpush.msra.mxu1 %v2387_v48  ;;  %1215 = vmatpush.msrb.mxu2 %v2482_v56 }
 0x425   :  { %v873_v24 = vpop.f32.mrf.mxu0  ;;  %v893_v29 = vpop.f32.mrf.mxu1 }
 0x426   :  { %v916_v35 = vadd.f32 %v873_v24, %v2797_v18  ;;  %v936_v41 = vadd.f32 %v893_v29, %v2798_v39  ;;  %v1295_v29 = vld [vmem:[%s2737_s7 + $0x38] sm:$0xff]  ;;  %v1293_v39 = vld [vmem:[%s2737_s7 + $0x28] sm:$0xff] }
 0x428   :  { %v1449_v43 = vmul.f32 -1.442695, %v916_v35  ;;  %v1450_v5 = vmul.f32 -1.442695, %v936_v41  ;;  %v1294_v35 = vld [vmem:[%s2737_s7 + $0x30] sm:$0xff] }
 0x42a   :  { %1534 = vpow2.f32 %v1449_v43  ;;  %v1292_v43 = vld [vmem:[%s2737_s7 + $0x20] sm:$0xff] }
 0x42b   :  { %1536 = vpow2.f32 %v1450_v5 }
 0x42c   :  { %v913_v32 = vpop.f32.mrf.mxu2 }
 0x42d   :  { %v956_v49 = vadd.f32 %v2241_v34, %v913_v32 }
 0x430   :  { %v1535_v37 = vpop.eup %1534 }
 0x431   :  { %v1537_v6 = vpop.eup %1536  ;;  %v920_v21 = vadd.f32 1.0, %v1535_v37 }
 0x432   :  { %v940_v22 = vadd.f32 1.0, %v1537_v6  ;;  %v1291_v6 = vld [vmem:[%s2737_s7 + $0x18] sm:$0xff] }
 0x433   :  { %1538 = vrcp.f32 %v920_v21  ;;  %v932_v47 = vand.u32 2147483648, %v920_v21  ;;  %v930_v52 = vand.u32 2147483647, %v920_v21  ;;  %vm926_vm2 = vweird.f32 %v920_v21 }
 0x434   :  { %1540 = vrcp.f32 %v940_v22  ;;  %v952_v8 = vand.u32 2147483648, %v940_v22  ;;  %vm946_vm6 = vweird.f32 %v940_v22  ;;  %v950_v60 = vand.u32 2147483647, %v940_v22 }
 0x435   :  { %v933_v57 = vor.u32 1.1754944e-38, %v932_v47  ;;  %vm931_vm4 = vcmp.eq.f32.partialorder %v930_v52, 8.507059e+37 }
 0x436   :  { %v953_v61 = vor.u32 1.1754944e-38, %v952_v8  ;;  %vm951_vm8 = vcmp.eq.f32.partialorder %v950_v60, 8.507059e+37 }
 0x439   :  { %v1539_v38 = vpop.eup %1538 }
 0x43a   :  { %v1541_v48 = vpop.eup %1540  ;;  %v922_v20 = vmul.f32 %v1539_v38, %v920_v21  ;;  %vm927_vm1 = vweird.f32 %v1539_v38  ;;  %v1290_v21 = vld [vmem:[%s2737_s7 + $0x10] sm:$0xff] }
 0x43b   :  { %v942_v40 = vmul.f32 %v1541_v48, %v940_v22  ;;  %vm928_vm3 = vmor %vm926_vm2, %vm927_vm1  ;;  %vm947_vm5 = vweird.f32 %v1541_v48  ;;  %v1289_v22 = vld [vmem:[%s2737_s7 + $0x8] sm:$0xff] }
 0x43c   :  { %v923_v42 = vsub.f32 1.0, %v922_v20  ;;  %vm948_vm7 = vmor %vm946_vm6, %vm947_vm5 }
 0x43d   :  { %v943_v44 = vsub.f32 1.0, %v942_v40 }
 0x43e   :  { %v924_v56 = vmul.f32 %v1539_v38, %v923_v42 }
 0x43f   :  { %v944_v23 = vmul.f32 %v1541_v48, %v943_v44 }
 0x440   :  { %v925_v28 = vadd.f32 %v1539_v38, %v924_v56 }
 0x441   :  { %v945_v54 = vadd.f32 %v1541_v48, %v944_v23 }
 0x442   :  { %v929_v46 = vsel %vm928_vm3, %v1539_v38, %v925_v28 }
 0x443   :  { %v934_v16 = vsel %vm931_vm4, %v933_v57, %v929_v46  ;;  %v949_v53 = vsel %vm948_vm7, %v1541_v48, %v945_v54  ;;  %v1288_v48 = vld [vmem:[%s2737_s7] sm:$0xff] }
 0x444   :  { %v957_v17 = vmul.f32 %v956_v49, %v934_v16  ;;  %v954_v12 = vsel %vm951_vm8, %v953_v61, %v949_v53  ;;  %v2650_v46 = vld [vmem:[%s2736_s6] ss:$0 sm:$0xff] }
 0x445   :  { %v960_v51 = vsub.f32 1.0, %v954_v12  ;;  %v962_v34 = vmul.f32 %v954_v12, %v2490_v11 }
 0x446   :  { %v958_v25 = vadd.f32 %v957_v17, %v2799_v30 }
 0x448   :  { %1542 = vtanh.f32 %v958_v25  ;;  %v2802_v25 = vld [vmem:[#allocation35_spill] sm:$0xff] }
 0x44e   :  { %v1543_v14 = vpop.eup %1542 }
 0x44f   :  { %v961_v63 = vmul.f32 %v1543_v14, %v960_v51 }
 0x451   :  { %v2576_v36 = vadd.f32 %v962_v34, %v961_v63 }
 0x453   :  { %980 = vmatmul.f32.vlgmr.msrb.gmra.mxu3 %v2576_v36  ;;  %1000 = vmatmul.f32.vlgmr.msrb.gmra.mxu0 %v2576_v36 }
 0x454   :  { %1020 = vmatmul.f32.vlgmr.msrb.gmra.mxu1 %v2576_v36  ;;  %1220 = vmatpush.msrb.mxu3 %v2401_v45  ;;  %v1303_v45 = vld [vmem:[%s2737_s7 + $0x78] sm:$0xff] }
 0x455   :  { %1308 = vmatpush.msrb.mxu0 %v1303_v45 }
 0x456   :  { %1221 = vmatpush.msrb.mxu3 %v2408_v31  ;;  %v1302_v31 = vld [vmem:[%s2737_s7 + $0x70] sm:$0xff] }
 0x457   :  { %1309 = vmatpush.msrb.mxu0 %v1302_v31 }
 0x458   :  { %1222 = vmatpush.msrb.mxu3 %v2501_v55 }
 0x45a   :  { %1223 = vmatpush.msrb.mxu3 %v2506_v59  ;;  %v2800_v59 = vld [vmem:[#allocation34_spill] sm:$0xff] }
 0x45c   :  { %1224 = vmatpush.msrb.mxu3 %v2511_v26 }
 0x45e   :  { %1225 = vmatpush.msrb.mxu3 %v2516_v15  ;;  %v1301_v15 = vld [vmem:[%s2737_s7 + $0x68] sm:$0xff] }
 0x45f   :  { %1310 = vmatpush.msrb.mxu0 %v1301_v15  ;;  %v1369_v15 = vld [vmem:[#allocation6 + $0x60] sm:$0xff] }
 0x460   :  { %1226 = vmatpush.msrb.mxu3 %v2521_v3 }
 0x462   :  { %1227 = vmatpush.msrb.mxu3 %v2526_v50  ;;  %v1300_v50 = vld [vmem:[%s2737_s7 + $0x60] sm:$0xff] }
 0x463   :  { %1311 = vmatpush.msrb.mxu0 %v1300_v50 }
 0x464   :  { %1228 = vmatpush.msrb.mxu3 %v2531_v58  ;;  %v1299_v58 = vld [vmem:[%s2737_s7 + $0x58] sm:$0xff] }
 0x465   :  { %1312 = vmatpush.msrb.mxu0 %v1299_v58 }
 0x466   :  { %1229 = vmatpush.msrb.mxu3 %v2536_v62  ;;  %v1298_v62 = vld [vmem:[%s2737_s7 + $0x50] sm:$0xff] }
 0x467   :  { %1313 = vmatpush.msrb.mxu0 %v1298_v62 }
 0x468   :  { %1230 = vmatpush.msrb.mxu3 %v2541_v1 }
 0x46a   :  { %1231 = vmatpush.msrb.mxu3 %v2546_v4  ;;  %v2801_v4 = vld [vmem:[#allocation21_spill] sm:$0xff] }
 0x46c   :  { %1232 = vmatpush.msrb.mxu3 %v2551_v7 }
 0x46e   :  { %1233 = vmatpush.msrb.mxu3 %v2556_v10  ;;  %v1297_v10 = vld [vmem:[%s2737_s7 + $0x48] sm:$0xff] }
 0x46f   :  { %1314 = vmatpush.msrb.mxu0 %v1297_v10  ;;  %v1364_v10 = vld [vmem:[#allocation6 + $0x38] sm:$0xff] }
 0x470   :  { %1234 = vmatpush.msrb.mxu3 %v2561_v13 }
 0x472   :  { %1235 = vmatpush.msrb.mxu3 %v2566_v19  ;;  %v1296_v19 = vld [vmem:[%s2737_s7 + $0x40] sm:$0xff] }
 0x473   :  { %1315 = vmatpush.msrb.mxu0 %v1296_v19 }
 0x475   :  { %1316 = vmatpush.msrb.mxu0 %v1295_v29 }
 0x477   :  { %1317 = vmatpush.msrb.mxu0 %v1294_v35  ;;  %v1362_v35 = vld [vmem:[#allocation6 + $0x28] sm:$0xff] }
 0x479   :  { %1318 = vmatpush.msrb.mxu0 %v1293_v39  ;;  %v1361_v39 = vld [vmem:[#allocation6 + $0x20] sm:$0xff] }
 0x47b   :  { %1319 = vmatpush.msrb.mxu0 %v1292_v43  ;;  %v1359_v43 = vld [vmem:[#allocation6 + $0x10] sm:$0xff] }
 0x47d   :  { %1320 = vmatpush.msrb.mxu0 %v1291_v6 }
 0x47f   :  { %1321 = vmatpush.msrb.mxu0 %v1290_v21 }
 0x481   :  { %1322 = vmatpush.msrb.mxu0 %v1289_v22  ;;  %v1357_v22 = vld [vmem:[#allocation6] sm:$0xff] }
 0x483   :  { %1323 = vmatpush.msrb.mxu0 %v1288_v48 }
 0x4d0   :  { %v1001_v55 = vpop.f32.mrf.mxu0 }
 0x4d1   :  { %v1044_v26 = vadd.f32 %v1001_v55, %v2800_v59  ;;  %v1021_v32 = vpop.f32.mrf.mxu1  ;;  %v1372_v55 = vld [vmem:[#allocation6 + $0x78] sm:$0xff]  ;;  %v1371_v59 = vld [vmem:[#allocation6 + $0x70] sm:$0xff] }
 0x4d2   :  { %v1064_v49 = vadd.f32 %v2650_v46, %v1021_v32  ;;  %1377 = vmatpush.msrb.mxu1 %v1372_v55 }
 0x4d3   :  { %v1452_v3 = vmul.f32 -1.442695, %v1044_v26  ;;  %v1370_v26 = vld [vmem:[#allocation6 + $0x68] sm:$0xff] }
 0x4d4   :  { %1378 = vmatpush.msrb.mxu1 %v1371_v59 }
 0x4d5   :  { %1544 = vpow2.f32 %v1452_v3  ;;  %v1368_v3 = vld [vmem:[#allocation6 + $0x58] sm:$0xff] }
 0x4d6   :  { %v981_v1 = vpop.f32.mrf.mxu3  ;;  %1379 = vmatpush.msrb.mxu1 %v1370_v26 }
 0x4d7   :  { %v1024_v7 = vadd.f32 %v981_v1, %v2801_v4  ;;  %v1366_v4 = vld [vmem:[#allocation6 + $0x48] sm:$0xff] }
 0x4d8   :  { %1380 = vmatpush.msrb.mxu1 %v1369_v15 }
 0x4d9   :  { %v1451_v13 = vmul.f32 -1.442695, %v1024_v7  ;;  %v1365_v7 = vld [vmem:[#allocation6 + $0x40] sm:$0xff] }
 0x4da   :  { %1381 = vmatpush.msrb.mxu1 %v1368_v3 }
 0x4db   :  { %v1545_v24 = vpop.eup %1544  ;;  %1546 = vpow2.f32 %v1451_v13  ;;  %v1363_v13 = vld [vmem:[#allocation6 + $0x30] sm:$0xff] }
 0x4dc   :  { %v1048_v18 = vadd.f32 1.0, %v1545_v24 }
 0x4de   :  { %1548 = vrcp.f32 %v1048_v18  ;;  %v1060_v17 = vand.u32 2147483648, %v1048_v18  ;;  %vm1054_vm14 = vweird.f32 %v1048_v18  ;;  %v1058_v30 = vand.u32 2147483647, %v1048_v18 }
 0x4e0   :  { %v1061_v12 = vor.u32 1.1754944e-38, %v1060_v17  ;;  %vm1059_vm0 = vcmp.eq.f32.partialorder %v1058_v30, 8.507059e+37  ;;  %v2805_v17 = vld [vmem:[#allocation37_spill] sm:$0xff] }
 0x4e1   :  { %v1547_v41 = vpop.eup %1546 }
 0x4e2   :  { %v1028_v5 = vadd.f32 1.0, %v1547_v41  ;;  %v1360_v41 = vld [vmem:[#allocation6 + $0x18] sm:$0xff] }
 0x4e4   :  { %1550 = vrcp.f32 %v1028_v5  ;;  %v1549_v37 = vpop.eup %1548  ;;  %v1040_v47 = vand.u32 2147483648, %v1028_v5  ;;  %v1038_v52 = vand.u32 2147483647, %v1028_v5  ;;  %vm1034_vm10 = vweird.f32 %v1028_v5 }
 0x4e5   :  { %v1050_v38 = vmul.f32 %v1549_v37, %v1048_v18  ;;  %vm1055_vm13 = vweird.f32 %v1549_v37 }
 0x4e6   :  { %v1041_v57 = vor.u32 1.1754944e-38, %v1040_v47  ;;  %vm1039_vm12 = vcmp.eq.f32.partialorder %v1038_v52, 8.507059e+37  ;;  %vm1056_vm15 = vmor %vm1054_vm14, %vm1055_vm13 }
 0x4e7   :  { %v1051_v42 = vsub.f32 1.0, %v1050_v38 }
 0x4e9   :  { %v1052_v23 = vmul.f32 %v1549_v37, %v1051_v42 }
 0x4ea   :  { %v1551_v20 = vpop.eup %1550 }
 0x4eb   :  { %v1030_v40 = vmul.f32 %v1551_v20, %v1028_v5  ;;  %vm1035_vm9 = vweird.f32 %v1551_v20  ;;  %v1053_v16 = vadd.f32 %v1549_v37, %v1052_v23  ;;  %v1358_v5 = vld [vmem:[#allocation6 + $0x8] sm:$0xff] }
 0x4ec   :  { %vm1036_vm11 = vmor %vm1034_vm10, %vm1035_vm9 }
 0x4ed   :  { %v1031_v44 = vsub.f32 1.0, %v1030_v40  ;;  %v1057_v61 = vsel %vm1056_vm15, %v1549_v37, %v1053_v16 }
 0x4ee   :  { %v1062_v51 = vsel %vm1059_vm0, %v1061_v12, %v1057_v61 }
 0x4ef   :  { %v1032_v56 = vmul.f32 %v1551_v20, %v1031_v44  ;;  %v1068_v14 = vsub.f32 1.0, %v1062_v51  ;;  %v1070_v45 = vmul.f32 %v1062_v51, %v2576_v36 }
 0x4f1   :  { %v1033_v28 = vadd.f32 %v1551_v20, %v1032_v56 }
 0x4f3   :  { %v1037_v54 = vsel %vm1036_vm11, %v1551_v20, %v1033_v28 }
 0x4f4   :  { %v1042_v8 = vsel %vm1039_vm12, %v1041_v57, %v1037_v54 }
 0x4f5   :  { %v1065_v60 = vmul.f32 %v1064_v49, %v1042_v8 }
 0x4f7   :  { %v1066_v53 = vadd.f32 %v1065_v60, %v2802_v25 }
 0x4f9   :  { %1552 = vtanh.f32 %v1066_v53 }
 0x4ff   :  { %v1553_v63 = vpop.eup %1552 }
 0x500   :  { %v1069_v34 = vmul.f32 %v1553_v63, %v1068_v14 }
 0x502   :  { %v2655_v31 = vadd.f32 %v1070_v45, %v1069_v34  ;;  %v2674_v34 = vld [vmem:[%s2738_s8] ss:$0 sm:$0xff] }
 0x504   :  { %1088 = vmatmul.f32.vlgmr.msra.gmra.mxu2 %v2655_v31  ;;  %1108 = vmatmul.f32.vlgmr.msra.gmra.mxu3 %v2655_v31 }
 0x505   :  { %1128 = vmatmul.f32.vlgmr.msra.gmra.mxu0 %v2655_v31 }
 0x50d   :  { %1324 = vmatmul.f32.vlgmr.msrb.gmra.mxu0 %v2246_v0 }
 0x515   :  { %1327 = vmatmul.f32.gmra.mxu0 %v2306_v2  ;;  %v2803_v2 = vld [vmem:[#allocation23_spill] sm:$0xff] }
 0x51d   :  { %1330 = vmatmul.f32.gmra.mxu0 %v2396_v27  ;;  %v2804_v27 = vld [vmem:[#allocation36_spill] sm:$0xff] }
 0x525   :  { %1333 = vmatmul.f32.gmra.mxu0 %v2490_v11  ;;  %v1367_v11 = vld [vmem:[#allocation6 + $0x50] sm:$0xff] }
 0x526   :  { %1382 = vmatpush.msrb.mxu1 %v1367_v11 }
 0x528   :  { %1383 = vmatpush.msrb.mxu1 %v1366_v4 }
 0x52a   :  { %1384 = vmatpush.msrb.mxu1 %v1365_v7 }
 0x52c   :  { %1385 = vmatpush.msrb.mxu1 %v1364_v10 }
 0x52d   :  { %1336 = vmatmul.f32.gmra.mxu0 %v2576_v36 }
 0x52e   :  { %1386 = vmatpush.msrb.mxu1 %v1363_v13  ;;  %v2806_v13 = vld [vmem:[#allocation25_spill] sm:$0xff] }
 0x530   :  { %1387 = vmatpush.msrb.mxu1 %v1362_v35 }
 0x532   :  { %1388 = vmatpush.msrb.mxu1 %v1361_v39  ;;  %v2690_v39 = vld [vmem:[#allocation7] ss:$0 sm:$0xff] }
 0x534   :  { %1389 = vmatpush.msrb.mxu1 %v1360_v41 }
 0x535   :  { %1339 = vmatmul.f32.gmra.mxu0 %v2655_v31 }
 0x536   :  { %1390 = vmatpush.msrb.mxu1 %v1359_v43  ;;  %v2807_v43 = vld [vmem:[#allocation38_spill] sm:$0xff] }
 0x538   :  { %1391 = vmatpush.msrb.mxu1 %v1358_v5 }
 0x53a   :  { %1392 = vmatpush.msrb.mxu1 %v1357_v22 }
 0x582   :  { %v1129_v42 = vpop.f32.mrf.mxu0 }
 0x583   :  { %v1172_v32 = vadd.f32 %v2650_v46, %v1129_v42 }
 0x587   :  { %v1089_v50 = vpop.f32.mrf.mxu2  ;;  %v1109_v0 = vpop.f32.mrf.mxu3 }
 0x588   :  { %v1132_v58 = vadd.f32 %v1089_v50, %v2803_v2  ;;  %v1152_v62 = vadd.f32 %v1109_v0, %v2804_v27 }
 0x58a   :  { %v1453_v36 = vmul.f32 -1.442695, %v1132_v58  ;;  %v1454_v1 = vmul.f32 -1.442695, %v1152_v62  ;;  %v1325_v53 = vpop.f32.mrf.mxu0 }
 0x58b   :  { %v1326_v59 = vadd.f32 %v2674_v34, %v1325_v53  ;;  %v370_v53 = vadd.f32 %v2299_v33, %v2204_v9 }
 0x58c   :  { %1554 = vpow2.f32 %v1453_v36 }
 0x58d   :  { %1556 = vpow2.f32 %v1454_v1  ;;  %v1349_v26 = vmax.f32 %v1326_v59, 0.0 }
 0x592   :  { %v1555_v19 = vpop.eup %1554  ;;  %v1328_v55 = vpop.f32.mrf.mxu0 }
 0x593   :  { %v1557_v24 = vpop.eup %1556  ;;  %v1136_v29 = vadd.f32 1.0, %v1555_v19  ;;  %v1329_v15 = vadd.f32 %v2674_v34, %v1328_v55 }
 0x594   :  { %v1156_v18 = vadd.f32 1.0, %v1557_v24 }
 0x595   :  { %1558 = vrcp.f32 %v1136_v29  ;;  %v1148_v20 = vand.u32 2147483648, %v1136_v29  ;;  %v1146_v47 = vand.u32 2147483647, %v1136_v29  ;;  %vm1142_vm2 = vweird.f32 %v1136_v29 }
 0x596   :  { %1560 = vrcp.f32 %v1156_v18  ;;  %v1168_v16 = vand.u32 2147483648, %v1156_v18  ;;  %vm1162_vm6 = vweird.f32 %v1156_v18  ;;  %v1166_v8 = vand.u32 2147483647, %v1156_v18 }
 0x597   :  { %v1149_v23 = vor.u32 1.1754944e-38, %v1148_v20  ;;  %vm1147_vm4 = vcmp.eq.f32.partialorder %v1146_v47, 8.507059e+37  ;;  %v1350_v3 = vmax.f32 %v1329_v15, 0.0 }
 0x598   :  { %v1169_v25 = vor.u32 1.1754944e-38, %v1168_v16  ;;  %vm1167_vm8 = vcmp.eq.f32.partialorder %v1166_v8, 8.507059e+37 }
 0x59b   :  { %v1559_v37 = vpop.eup %1558 }
 0x59c   :  { %v1561_v6 = vpop.eup %1560  ;;  %v1138_v21 = vmul.f32 %v1559_v37, %v1136_v29  ;;  %vm1143_vm1 = vweird.f32 %v1559_v37 }
 0x59d   :  { %v1158_v38 = vmul.f32 %v1561_v6, %v1156_v18  ;;  %vm1144_vm3 = vmor %vm1142_vm2, %vm1143_vm1  ;;  %vm1163_vm5 = vweird.f32 %v1561_v6 }
 0x59e   :  { %v1139_v48 = vsub.f32 1.0, %v1138_v21  ;;  %vm1164_vm7 = vmor %vm1162_vm6, %vm1163_vm5 }
 0x59f   :  { %v1159_v40 = vsub.f32 1.0, %v1158_v38 }
 0x5a0   :  { %v1140_v44 = vmul.f32 %v1559_v37, %v1139_v48 }
 0x5a1   :  { %v1160_v56 = vmul.f32 %v1561_v6, %v1159_v40 }
 0x5a2   :  { %v1141_v52 = vadd.f32 %v1559_v37, %v1140_v44 }
 0x5a3   :  { %v1161_v49 = vadd.f32 %v1561_v6, %v1160_v56 }
 0x5a4   :  { %v1145_v28 = vsel %vm1144_vm3, %v1559_v37, %v1141_v52 }
 0x5a5   :  { %v1150_v57 = vsel %vm1147_vm4, %v1149_v23, %v1145_v28  ;;  %v1165_v30 = vsel %vm1164_vm7, %v1561_v6, %v1161_v49 }
 0x5a6   :  { %v1173_v54 = vmul.f32 %v1172_v32, %v1150_v57  ;;  %v1170_v61 = vsel %vm1167_vm8, %v1169_v25, %v1165_v30 }
 0x5a7   :  { %v1176_v12 = vsub.f32 1.0, %v1170_v61  ;;  %v1178_v63 = vmul.f32 %v1170_v61, %v2655_v31  ;;  %v1331_v31 = vpop.f32.mrf.mxu0 }
 0x5a8   :  { %v1174_v60 = vadd.f32 %v1173_v54, %v2805_v17  ;;  %v1332_v50 = vadd.f32 %v2674_v34, %v1331_v31 }
 0x5aa   :  { %1562 = vtanh.f32 %v1174_v60  ;;  %v1351_v2 = vmax.f32 %v1332_v50, 0.0 }
 0x5af   :  { %v1334_v0 = vpop.f32.mrf.mxu0 }
 0x5b0   :  { %v1563_v51 = vpop.eup %1562  ;;  %v1335_v58 = vadd.f32 %v2674_v34, %v1334_v0 }
 0x5b1   :  { %v1177_v14 = vmul.f32 %v1563_v51, %v1176_v12 }
 0x5b2   :  { %v1352_v62 = vmax.f32 %v1335_v58, 0.0 }
 0x5b3   :  { %v2676_v45 = vadd.f32 %v1178_v63, %v1177_v14 }
 0x5b5   :  { %1196 = vmatmul.f32.vlgmr.msra.gmra.mxu1 %v2676_v45  ;;  %1216 = vmatmul.f32.vlgmr.msrb.gmra.mxu2 %v2676_v45 }
 0x5b6   :  { %1236 = vmatmul.f32.vlgmr.msrb.gmra.mxu3 %v2676_v45  ;;  %1342 = vmatmul.f32.gmra.mxu0 %v2676_v45 }
 0x5b7   :  { %v1337_v27 = vpop.f32.mrf.mxu0 }
 0x5b8   :  { %v1338_v11 = vadd.f32 %v2674_v34, %v1337_v27 }
 0x5ba   :  { %v1353_v36 = vmax.f32 %v1338_v11, 0.0 }
 0x5bd   :  { %1393 = vmatmul.f32.vlgmr.msrb.gmra.mxu1 %v1349_v26 }
 0x5bf   :  { %v1340_v1 = vpop.f32.mrf.mxu0 }
 0x5c0   :  { %v1341_v4 = vadd.f32 %v2674_v34, %v1340_v1 }
 0x5c2   :  { %v1354_v7 = vmax.f32 %v1341_v4, 0.0 }
 0x5c5   :  { %1396 = vmatmul.f32.gmra.mxu1 %v1350_v3 }
 0x5cd   :  { %1399 = vmatmul.f32.gmra.mxu1 %v1351_v2 }
 0x5d5   :  { %1402 = vmatmul.f32.gmra.mxu1 %v1352_v62 }
 0x5dd   :  { %1405 = vmatmul.f32.gmra.mxu1 %v1353_v36 }
 0x5e5   :  { %1408 = vmatmul.f32.gmra.mxu1 %v1354_v7 }
 0x632   :  { %v1197_v10 = vpop.f32.mrf.mxu1 }
 0x633   :  { %v1240_v19 = vadd.f32 %v1197_v10, %v2806_v13  ;;  %v1343_v24 = vpop.f32.mrf.mxu0 }
 0x634   :  { %v1344_v29 = vadd.f32 %v2674_v34, %v1343_v24 }
 0x635   :  { %v1455_v18 = vmul.f32 -1.442695, %v1240_v19 }
 0x636   :  { %v1355_v35 = vmax.f32 %v1344_v29, 0.0 }
 0x637   :  { %1564 = vpow2.f32 %v1455_v18 }
 0x638   :  { %1411 = vmatmul.f32.gmra.mxu1 %v1355_v35  ;;  %v1217_v41 = vpop.f32.mrf.mxu2 }
 0x639   :  { %v1260_v5 = vadd.f32 %v1217_v41, %v2807_v43  ;;  %v1237_v54 = vpop.f32.mrf.mxu3 }
 0x63a   :  { %v1394_v37 = vpop.f32.mrf.mxu1  ;;  %v1280_v30 = vadd.f32 %v2650_v46, %v1237_v54 }
 0x63b   :  { %v1456_v6 = vmul.f32 -1.442695, %v1260_v5  ;;  %v1395_v21 = vadd.f32 %v2690_v39, %v1394_v37 }
 0x63d   :  { %v1565_v22 = vpop.eup %1564  ;;  %1566 = vpow2.f32 %v1456_v6  ;;  %1418 = vst [vmem:[%s2741_s11] sm:$0xff] %v1395_v21 }
 0x63e   :  { %v1244_v38 = vadd.f32 1.0, %v1565_v22 }
 0x640   :  { %1568 = vrcp.f32 %v1244_v38  ;;  %v1256_v52 = vand.u32 2147483648, %v1244_v38  ;;  %v1254_v28 = vand.u32 2147483647, %v1244_v38  ;;  %vm1250_vm10 = vweird.f32 %v1244_v38 }
 0x642   :  { %v1397_v48 = vpop.f32.mrf.mxu1  ;;  %v1257_v17 = vor.u32 1.1754944e-38, %v1256_v52  ;;  %vm1255_vm12 = vcmp.eq.f32.partialorder %v1254_v28, 8.507059e+37 }
 0x643   :  { %v1567_v20 = vpop.eup %1566  ;;  %v1398_v40 = vadd.f32 %v2690_v39, %v1397_v48 }
 0x644   :  { %v1264_v42 = vadd.f32 1.0, %v1567_v20 }
 0x645   :  { %1419 = vst [vmem:[%s2741_s11 + $0x8] sm:$0xff] %v1398_v40 }
 0x646   :  { %v1569_v44 = vpop.eup %1568  ;;  %1570 = vrcp.f32 %v1264_v42  ;;  %v1276_v14 = vand.u32 2147483648, %v1264_v42  ;;  %v1274_v55 = vand.u32 2147483647, %v1264_v42  ;;  %vm1270_vm14 = vweird.f32 %v1264_v42 }
 0x647   :  { %v1246_v47 = vmul.f32 %v1569_v44, %v1244_v38  ;;  %vm1251_vm9 = vweird.f32 %v1569_v44 }
 0x648   :  { %vm1252_vm11 = vmor %vm1250_vm10, %vm1251_vm9  ;;  %v1277_v9 = vor.u32 1.1754944e-38, %v1276_v14  ;;  %vm1275_vm0 = vcmp.eq.f32.partialorder %v1274_v55, 8.507059e+37 }
 0x649   :  { %v1247_v56 = vsub.f32 1.0, %v1246_v47 }
 0x64a   :  { %v1400_v23 = vpop.f32.mrf.mxu1 }
 0x64b   :  { %v1248_v32 = vmul.f32 %v1569_v44, %v1247_v56  ;;  %v1401_v57 = vadd.f32 %v2690_v39, %v1400_v23 }
 0x64c   :  { %v1571_v49 = vpop.eup %1570 }
 0x64d   :  { %v1249_v16 = vadd.f32 %v1569_v44, %v1248_v32  ;;  %1420 = vst [vmem:[%s2741_s11 + $0x10] sm:$0xff] %v1401_v57  ;;  %v1266_v8 = vmul.f32 %v1571_v49, %v1264_v42  ;;  %vm1271_vm13 = vweird.f32 %v1571_v49 }
 0x64e   :  { %vm1272_vm15 = vmor %vm1270_vm14, %vm1271_vm13 }
 0x64f   :  { %v1253_v60 = vsel %vm1252_vm11, %v1569_v44, %v1249_v16  ;;  %v1267_v25 = vsub.f32 1.0, %v1266_v8 }
 0x650   :  { %v1258_v61 = vsel %vm1255_vm12, %v1257_v17, %v1253_v60 }
 0x651   :  { %v1281_v12 = vmul.f32 %v1280_v30, %v1258_v61  ;;  %v1268_v51 = vmul.f32 %v1571_v49, %v1267_v25 }
 0x652   :  { %v1403_v63 = vpop.f32.mrf.mxu1 }
 0x653   :  { %v1282_v59 = vadd.f32 %v1281_v12, %v370_v53  ;;  %v1404_v26 = vadd.f32 %v2690_v39, %v1403_v63  ;;  %v1269_v31 = vadd.f32 %v1571_v49, %v1268_v51 }
 0x655   :  { %1572 = vtanh.f32 %v1282_v59  ;;  %1421 = vst [vmem:[%s2741_s11 + $0x18] sm:$0xff] %v1404_v26  ;;  %v1273_v46 = vsel %vm1272_vm15, %v1571_v49, %v1269_v31 }
 0x656   :  { %v1278_v33 = vsel %vm1275_vm0, %v1277_v9, %v1273_v46 }
 0x657   :  { %v1284_v3 = vsub.f32 1.0, %v1278_v33  ;;  %v1286_v58 = vmul.f32 %v1278_v33, %v2676_v45 }
 0x65a   :  { %v1406_v15 = vpop.f32.mrf.mxu1 }
 0x65b   :  { %v1573_v50 = vpop.eup %1572  ;;  %v1407_v0 = vadd.f32 %v2690_v39, %v1406_v15 }
 0x65c   :  { %v1285_v2 = vmul.f32 %v1573_v50, %v1284_v3 }
 0x65d   :  { %1422 = vst [vmem:[%s2741_s11 + $0x20] sm:$0xff] %v1407_v0 }
 0x65e   :  { %v1287_v27 = vadd.f32 %v1286_v58, %v1285_v2 }
 0x660   :  { %1345 = vmatmul.f32.gmra.mxu0 %v1287_v27 }
 0x662   :  { %v1409_v62 = vpop.f32.mrf.mxu1 }
 0x663   :  { %v1410_v11 = vadd.f32 %v2690_v39, %v1409_v62 }
 0x665   :  { %1423 = vst [vmem:[%s2741_s11 + $0x28] sm:$0xff] %v1410_v11 }
 0x6b5   :  { %v1412_v36 = vpop.f32.mrf.mxu1 }
 0x6b6   :  { %v1413_v1 = vadd.f32 %v2690_v39, %v1412_v36 }
 0x6b8   :  { %1424 = vst [vmem:[%s2741_s11 + $0x30] sm:$0xff] %v1413_v1 }
 0x6dd   :  { %v1346_v45 = vpop.f32.mrf.mxu0 }
 0x6de   :  { %v1347_v4 = vadd.f32 %v2674_v34, %v1346_v45 }
 0x6e0   :  { %v1356_v7 = vmax.f32 %v1347_v4, 0.0 }
 0x6e2   :  { %1414 = vmatmul.f32.gmra.mxu1 %v1356_v7 }
 0x75f   :  { %v1415_v10 = vpop.f32.mrf.mxu1 }
 0x760   :  { %v1416_v13 = vadd.f32 %v2690_v39, %v1415_v10 }
 0x762   :  { %1425 = vst [vmem:[%s2741_s11 + $0x38] sm:$0xff] %v1416_v13 }
 0x763   :  { %1430 = vsyncpa [#allocation3], 1 }
 0x764   :  { %1431 = vsyncpa [#allocation5], 1 }
 0x765   :  { %1432 = vsyncpa [#allocation8], 1 }

</bundles_post_ra>
